<compile_context>
chip_gen: v5e
topology: v5e:2x2
jax: 0.10.0
libtpu: 0.0.40
codegen_flags: <defaults>
</compile_context>

<pallas_src>
import functools

import jax
import jax.numpy as jnp
from jax.experimental import pallas as pl
from jax.experimental.pallas import tpu as pltpu


# ---------------------------------------------------------------------------
# Pallas kernels
# ---------------------------------------------------------------------------

def _conv_stats_kernel(*refs, n_in, stride, Ho, Wo):
    """Fused 3x3 conv (patches built in VMEM) + per-channel sum / sum-of-sq.

    refs = (x_ref_0..x_ref_{n_in-1}, w_ref_0..w_ref_{n_in-1},
            y_ref, sum_ref, sq_ref)

    x_ref_i : [stride*stride, Hpp, Wpp, Cin_i]  bf16 (padded / phase-split)
    w_ref_i : [9, Cin_i, Cout]                  bf16 (per-tap weight)
    y_ref   : [1, Ho, Wo, Cout]                 bf16
    sum_ref : [1, 1, Cout]                      f32 (per-image partial sums)
    sq_ref  : [1, 1, Cout]                      f32
    """
    x_refs = refs[:n_in]
    w_refs = refs[n_in:2 * n_in]
    y_ref, sum_ref, sq_ref = refs[2 * n_in:]
    cout = y_ref.shape[-1]

    # Hoist the 9 per-tap weight chunks of every input out of the row loop.
    taps_per_input = [[w_ref[k] for k in range(9)] for w_ref in w_refs]

    s_acc = jnp.zeros((1, cout), jnp.float32)
    q_acc = jnp.zeros((1, cout), jnp.float32)
    for h in range(Ho):
        acc = jnp.zeros((Wo, cout), jnp.float32)
        for x_ref, taps in zip(x_refs, taps_per_input):
            for dy in range(3):
                for dx in range(3):
                    if stride == 1:
                        p, r, c0 = 0, h + dy, dx
                    else:  # stride == 2 on a 2x2 phase-split input
                        p = 2 * (dy % 2) + (dx % 2)
                        r, c0 = h + dy // 2, dx // 2
                    patch = x_ref[p, r, c0:c0 + Wo, :]          # [Wo, Cin] bf16
                    acc = acc + jnp.dot(patch, taps[3 * dy + dx],
                                        preferred_element_type=jnp.float32)
        y_ref[0, h] = acc.astype(y_ref.dtype)
        # BatchNorm batch statistics, accumulated in f32 before the bf16 cast.
        s_acc = s_acc + jnp.sum(acc, axis=0, keepdims=True)
        q_acc = q_acc + jnp.sum(acc * acc, axis=0, keepdims=True)
    sum_ref[0] = s_acc
    sq_ref[0] = q_acc


def _bn_lrelu_kernel(y_ref, scale_ref, bias_ref, o_ref, *, slope):
    # Fused BatchNorm affine (precomputed scale/bias) + LeakyReLU, f32 math.
    y = y_ref[...].astype(jnp.float32)                    # [1, Ho, Wo, C]
    scale = scale_ref[...].reshape(1, 1, 1, -1)
    bias = bias_ref[...].reshape(1, 1, 1, -1)
    z = y * scale + bias
    o_ref[...] = jnp.where(z >= 0, z, slope * z).astype(o_ref.dtype)


# ---------------------------------------------------------------------------
# pallas_call wrappers
# ---------------------------------------------------------------------------

def pallas_conv_stats(x_list, w_list, *, stride, batch, Ho, Wo, Cout):
    """y[n] = sum_i conv3x3(x_i[n], w_i); also per-image channel sum/sumsq."""
    n_in = len(x_list)
    phases = stride * stride
    in_specs = []
    for x in x_list:
        _, hpp, wpp, cin = x.shape                     # first dim = batch*phases
        in_specs.append(
            pl.BlockSpec((phases, hpp, wpp, cin), lambda n: (n, 0, 0, 0)))
    for w in w_list:
        k9, cin, co = w.shape
        in_specs.append(pl.BlockSpec((k9, cin, co), lambda n: (0, 0, 0)))

    out_shape = (jax.ShapeDtypeStruct((batch, Ho, Wo, Cout), jnp.bfloat16),
                 jax.ShapeDtypeStruct((batch, 1, Cout), jnp.float32),
                 jax.ShapeDtypeStruct((batch, 1, Cout), jnp.float32))
    out_specs = (pl.BlockSpec((1, Ho, Wo, Cout), lambda n: (n, 0, 0, 0)),
                 pl.BlockSpec((1, 1, Cout), lambda n: (n, 0, 0)),
                 pl.BlockSpec((1, 1, Cout), lambda n: (n, 0, 0)))

    kernel = functools.partial(_conv_stats_kernel, n_in=n_in, stride=stride,
                               Ho=Ho, Wo=Wo)
    return pl.pallas_call(
        kernel,
        out_shape=out_shape,
        grid=(batch,),
        in_specs=in_specs,
        out_specs=out_specs,
        compiler_params=pltpu.CompilerParams(
            dimension_semantics=("parallel",)),
    )(*x_list, *w_list)


def pallas_bn_lrelu(y, scale, bias, slope=0.2):
    n, ho, wo, c = y.shape
    return pl.pallas_call(
        functools.partial(_bn_lrelu_kernel, slope=slope),
        out_shape=jax.ShapeDtypeStruct((n, ho, wo, c), jnp.bfloat16),
        grid=(n,),
        in_specs=[pl.BlockSpec((1, ho, wo, c), lambda i: (i, 0, 0, 0)),
                  pl.BlockSpec((1, c), lambda i: (0, 0)),
                  pl.BlockSpec((1, c), lambda i: (0, 0))],
        out_specs=pl.BlockSpec((1, ho, wo, c), lambda i: (i, 0, 0, 0)),
        compiler_params=pltpu.CompilerParams(
            dimension_semantics=("parallel",)),
    )(y, scale, bias)


# ---------------------------------------------------------------------------
# Glue (padding, phase split, upsample, BN scale/bias) — tiny plain-JAX ops
# ---------------------------------------------------------------------------

def _pad1(x):
    return jnp.pad(x, ((0, 0), (1, 1), (1, 1), (0, 0)))


def _phase_split(x):
    """[N,H,W,C] (H,W even) -> [N*4, H//2+1, W//2+1, C] with
    out[4n + 2*ph + pw, i, j] = pad1(x)[n, 2i+ph, 2j+pw].  This lets the
    stride-2 conv kernel read its patches with plain unstrided static slices.
    """
    n, h, w, c = x.shape
    assert h % 2 == 0 and w % 2 == 0, (h, w)
    xp = _pad1(x)
    phases = [xp[:, ph::2, pw::2, :] for ph in range(2) for pw in range(2)]
    xs = jnp.stack(phases, axis=1)                 # [N, 4, H//2+1, W//2+1, C]
    return xs.reshape(n * 4, h // 2 + 1, w // 2 + 1, c)


def _upsample2x(x):
    # TODO(synk): fold nearest upsampling into the conv kernel's source
    # indexing instead of materializing the 4x-larger tensor in HBM.
    return jnp.repeat(jnp.repeat(x, 2, axis=1), 2, axis=2)


def conv_bn_lrelu(x_list, params, *, stride, batch, Ho, Wo,
                  slope=0.2, eps=1e-5):
    cout = params["ws"][0].shape[-1]
    y, s, q = pallas_conv_stats(x_list, params["ws"], stride=stride,
                                batch=batch, Ho=Ho, Wo=Wo, Cout=cout)
    count = float(batch * Ho * Wo)
    mean = jnp.sum(s, axis=(0, 1)) / count                      # [Cout]
    # NOTE: E[x^2]-E[x]^2 in f32 (clamped); PyTorch's two-pass variance is more
    # robust for huge-magnitude activations but this matches default BN math.
    var = jnp.maximum(jnp.sum(q, axis=(0, 1)) / count - mean * mean, 0.0)
    inv_std = jax.lax.rsqrt(var + eps)
    scale = (params["gamma"] * inv_std).reshape(1, cout)
    bias = (params["beta"] - mean * params["gamma"] * inv_std).reshape(1, cout)
    return pallas_bn_lrelu(y, scale, bias, slope)


def down_block(x, params):                 # Conv(k3, s2, p1) + BN + LeakyReLU
    n, h, w, _ = x.shape
    return conv_bn_lrelu([_phase_split(x)], params, stride=2,
                         batch=n, Ho=h // 2, Wo=w // 2)


def mid_block(x, params):                  # Conv(k3, s1, p1) + BN + LeakyReLU
    n, h, w, _ = x.shape
    return conv_bn_lrelu([_pad1(x)], params, stride=1, batch=n, Ho=h, Wo=w)


def up_block(x, skip, params):
    # Reference: decoder(torch.cat([x, skip], 1)) with
    # UpBlock = 2x nearest upsample + Conv(k3,s1,p1) + BN + LeakyReLU.
    # conv(up(cat(x, skip))) == conv(up(x), Wx) + conv(up(skip), Ws):
    # the concatenated tensor is never materialized in HBM.
    n, h, w, _ = x.shape
    xu = _pad1(_upsample2x(x))
    su = _pad1(_upsample2x(skip))
    return conv_bn_lrelu([xu, su], params, stride=1,
                         batch=n, Ho=2 * h, Wo=2 * w)


# ---------------------------------------------------------------------------
# Parameters & forward
# ---------------------------------------------------------------------------

def init_conv_block(key, cins, cout):
    keys = jax.random.split(key, len(cins) + 2)
    fan_in = 9.0 * float(sum(cins))
    ws = [(jax.random.normal(keys[i], (9, cin, cout), jnp.float32)
           / jnp.sqrt(fan_in)).astype(jnp.bfloat16)
          for i, cin in enumerate(cins)]
    gamma = 1.0 + 0.1 * jax.random.normal(keys[-2], (cout,), jnp.float32)
    beta = 0.1 * jax.random.normal(keys[-1], (cout,), jnp.float32)
    return dict(ws=ws, gamma=gamma, beta=beta)


def init_unet(key, in_channels, out_channels, layers_channels):
    n_keys = 2 * len(layers_channels) + 2
    keys = iter(jax.random.split(key, n_keys))
    cin = in_channels
    encoders = []
    for cout in layers_channels:
        encoders.append(init_conv_block(next(keys), [cin], cout))
        cin = cout
    mid = init_conv_block(next(keys), [cin], cin)
    decoders = []
    for cout in reversed(layers_channels[:-1]):
        decoders.append(init_conv_block(next(keys), [cin, cin], cout))
        cin = cout
    decoders.append(init_conv_block(next(keys), [cin, cin], out_channels))
    return dict(encoders=encoders, mid=mid, decoders=decoders)


def unet_forward(params, x):
    """x: [N, H, W, Cin] (NHWC). Mirrors UNet.forward of the reference."""
    x = x.astype(jnp.bfloat16)           # bf16 activations in HBM, f32 math
    skips = []
    for p in params["encoders"]:
        x = down_block(x, p)
        skips.append(x)
    x = mid_block(x, params["mid"])
    for p, skip in zip(params["decoders"], reversed(skips)):
        x = up_block(x, skip, p)
    return x.astype(jnp.float32)


# ---------------------------------------------------------------------------
# Demo
# ---------------------------------------------------------------------------

if __name__ == "__main__":
    in_channels = 3
    out_channels = 3
    layers_channels = (8, 16, 32)
    # down_block_types / up_block_types are names only; see TODO(synk) above.

    key = jax.random.PRNGKey(0)
    k_params, k_x = jax.random.split(key)
    params = init_unet(k_params, in_channels, out_channels, layers_channels)

    # PyTorch-equivalent input would be NCHW [2, 3, 16, 16]; here NHWC.
    x = jax.random.normal(k_x, (2, 16, 16, in_channels), jnp.float32)

    out = jax.block_until_ready(unet_forward(params, x))

    assert out.shape == (2, 16, 16, out_channels), out.shape
    assert bool(jnp.all(jnp.isfinite(out)))
    print("KERNEL_OK")
</pallas_src>

<mosaic_0001>
module attributes {stable_mosaic.version = 11 : i64} {
  func.func @_conv_stats_kernel(%arg0: i32, %arg1: memref<4x9x9x3xbf16, #tpu.memory_space<vmem>>, %arg2: memref<9x3x8xbf16, #tpu.memory_space<vmem>>, %arg3: memref<1x8x8x8xbf16, #tpu.memory_space<vmem>>, %arg4: memref<1x1x8xf32, #tpu.memory_space<vmem>>, %arg5: memref<1x1x8xf32, #tpu.memory_space<vmem>>) attributes {dimension_semantics = [#tpu.dimension_semantics<parallel>], iteration_bounds = array<i64: 2>, scalar_prefetch = 0 : i64, scratch_operands = 0 : i64, tpu.core_type = #tpu.core_type<tc>, window_params = [{transform_indices = @transform_0, window_bounds = array<i64: 4, 9, 9, 3>}, {pipeline_mode = #tpu.pipeline_mode<synchronous>, transform_indices = @transform_1, window_bounds = array<i64: 9, 3, 8>}, {transform_indices = @transform_2, window_bounds = array<i64: 1, 8, 8, 8>}, {transform_indices = @transform_3, window_bounds = array<i64: 1, 1, 8>}, {transform_indices = @transform_4, window_bounds = array<i64: 1, 1, 8>}]} {
    %c0 = arith.constant 0 : index
    %c0_0 = arith.constant 0 : index
    %c0_1 = arith.constant 0 : index
    %0 = vector.load %arg2[%c0, %c0_0, %c0_1] : memref<9x3x8xbf16, #tpu.memory_space<vmem>>, vector<1x3x8xbf16>
    %1 = vector.shape_cast %0 : vector<1x3x8xbf16> to vector<3x8xbf16>
    %c1 = arith.constant 1 : index
    %c0_2 = arith.constant 0 : index
    %c0_3 = arith.constant 0 : index
    %2 = vector.load %arg2[%c1, %c0_2, %c0_3] : memref<9x3x8xbf16, #tpu.memory_space<vmem>>, vector<1x3x8xbf16>
    %3 = vector.shape_cast %2 : vector<1x3x8xbf16> to vector<3x8xbf16>
    %c2 = arith.constant 2 : index
    %c0_4 = arith.constant 0 : index
    %c0_5 = arith.constant 0 : index
    %4 = vector.load %arg2[%c2, %c0_4, %c0_5] : memref<9x3x8xbf16, #tpu.memory_space<vmem>>, vector<1x3x8xbf16>
    %5 = vector.shape_cast %4 : vector<1x3x8xbf16> to vector<3x8xbf16>
    %c3 = arith.constant 3 : index
    %c0_6 = arith.constant 0 : index
    %c0_7 = arith.constant 0 : index
    %6 = vector.load %arg2[%c3, %c0_6, %c0_7] : memref<9x3x8xbf16, #tpu.memory_space<vmem>>, vector<1x3x8xbf16>
    %7 = vector.shape_cast %6 : vector<1x3x8xbf16> to vector<3x8xbf16>
    %c4 = arith.constant 4 : index
    %c0_8 = arith.constant 0 : index
    %c0_9 = arith.constant 0 : index
    %8 = vector.load %arg2[%c4, %c0_8, %c0_9] : memref<9x3x8xbf16, #tpu.memory_space<vmem>>, vector<1x3x8xbf16>
    %9 = vector.shape_cast %8 : vector<1x3x8xbf16> to vector<3x8xbf16>
    %c5 = arith.constant 5 : index
    %c0_10 = arith.constant 0 : index
    %c0_11 = arith.constant 0 : index
    %10 = vector.load %arg2[%c5, %c0_10, %c0_11] : memref<9x3x8xbf16, #tpu.memory_space<vmem>>, vector<1x3x8xbf16>
    %11 = vector.shape_cast %10 : vector<1x3x8xbf16> to vector<3x8xbf16>
    %c6 = arith.constant 6 : index
    %c0_12 = arith.constant 0 : index
    %c0_13 = arith.constant 0 : index
    %12 = vector.load %arg2[%c6, %c0_12, %c0_13] : memref<9x3x8xbf16, #tpu.memory_space<vmem>>, vector<1x3x8xbf16>
    %13 = vector.shape_cast %12 : vector<1x3x8xbf16> to vector<3x8xbf16>
    %c7 = arith.constant 7 : index
    %c0_14 = arith.constant 0 : index
    %c0_15 = arith.constant 0 : index
    %14 = vector.load %arg2[%c7, %c0_14, %c0_15] : memref<9x3x8xbf16, #tpu.memory_space<vmem>>, vector<1x3x8xbf16>
    %15 = vector.shape_cast %14 : vector<1x3x8xbf16> to vector<3x8xbf16>
    %c8 = arith.constant 8 : index
    %c0_16 = arith.constant 0 : index
    %c0_17 = arith.constant 0 : index
    %16 = vector.load %arg2[%c8, %c0_16, %c0_17] : memref<9x3x8xbf16, #tpu.memory_space<vmem>>, vector<1x3x8xbf16>
    %17 = vector.shape_cast %16 : vector<1x3x8xbf16> to vector<3x8xbf16>
    %cst = arith.constant 0.000000e+00 : f32
    %18 = vector.broadcast %cst : f32 to vector<1x8xf32>
    %cst_18 = arith.constant 0.000000e+00 : f32
    %19 = vector.broadcast %cst_18 : f32 to vector<1x8xf32>
    %cst_19 = arith.constant 0.000000e+00 : f32
    %20 = vector.broadcast %cst_19 : f32 to vector<8x8xf32>
    %c0_20 = arith.constant 0 : index
    %c0_21 = arith.constant 0 : index
    %c0_22 = arith.constant 0 : index
    %c0_23 = arith.constant 0 : index
    %21 = vector.load %arg1[%c0_20, %c0_21, %c0_22, %c0_23] : memref<4x9x9x3xbf16, #tpu.memory_space<vmem>>, vector<1x1x8x3xbf16>
    %22 = vector.shape_cast %21 : vector<1x1x8x3xbf16> to vector<8x3xbf16>
    %cst_24 = arith.constant dense<0.000000e+00> : vector<8x8xf32>
    %23 = tpu.matmul %22, %1, %cst_24 {dimension_numbers = #tpu.dot_dimension_numbers<[1], [0], [0], [1], [0, 0, 1, 1], [], []>} : vector<8x3xbf16>, vector<3x8xbf16>, vector<8x8xf32> -> vector<8x8xf32>
    %24 = arith.addf %20, %23 : vector<8x8xf32>
    %c1_25 = arith.constant 1 : index
    %c0_26 = arith.constant 0 : index
    %c0_27 = arith.constant 0 : index
    %c0_28 = arith.constant 0 : index
    %25 = vector.load %arg1[%c1_25, %c0_26, %c0_27, %c0_28] : memref<4x9x9x3xbf16, #tpu.memory_space<vmem>>, vector<1x1x8x3xbf16>
    %26 = vector.shape_cast %25 : vector<1x1x8x3xbf16> to vector<8x3xbf16>
    %cst_29 = arith.constant dense<0.000000e+00> : vector<8x8xf32>
    %27 = tpu.matmul %26, %3, %cst_29 {dimension_numbers = #tpu.dot_dimension_numbers<[1], [0], [0], [1], [0, 0, 1, 1], [], []>} : vector<8x3xbf16>, vector<3x8xbf16>, vector<8x8xf32> -> vector<8x8xf32>
    %28 = arith.addf %24, %27 : vector<8x8xf32>
    %c0_30 = arith.constant 0 : index
    %c0_31 = arith.constant 0 : index
    %c1_32 = arith.constant 1 : index
    %c0_33 = arith.constant 0 : index
    %29 = vector.load %arg1[%c0_30, %c0_31, %c1_32, %c0_33] : memref<4x9x9x3xbf16, #tpu.memory_space<vmem>>, vector<1x1x8x3xbf16>
    %30 = vector.shape_cast %29 : vector<1x1x8x3xbf16> to vector<8x3xbf16>
    %cst_34 = arith.constant dense<0.000000e+00> : vector<8x8xf32>
    %31 = tpu.matmul %30, %5, %cst_34 {dimension_numbers = #tpu.dot_dimension_numbers<[1], [0], [0], [1], [0, 0, 1, 1], [], []>} : vector<8x3xbf16>, vector<3x8xbf16>, vector<8x8xf32> -> vector<8x8xf32>
    %32 = arith.addf %28, %31 : vector<8x8xf32>
    %c2_35 = arith.constant 2 : index
    %c0_36 = arith.constant 0 : index
    %c0_37 = arith.constant 0 : index
    %c0_38 = arith.constant 0 : index
    %33 = vector.load %arg1[%c2_35, %c0_36, %c0_37, %c0_38] : memref<4x9x9x3xbf16, #tpu.memory_space<vmem>>, vector<1x1x8x3xbf16>
    %34 = vector.shape_cast %33 : vector<1x1x8x3xbf16> to vector<8x3xbf16>
    %cst_39 = arith.constant dense<0.000000e+00> : vector<8x8xf32>
    %35 = tpu.matmul %34, %7, %cst_39 {dimension_numbers = #tpu.dot_dimension_numbers<[1], [0], [0], [1], [0, 0, 1, 1], [], []>} : vector<8x3xbf16>, vector<3x8xbf16>, vector<8x8xf32> -> vector<8x8xf32>
    %36 = arith.addf %32, %35 : vector<8x8xf32>
    %c3_40 = arith.constant 3 : index
    %c0_41 = arith.constant 0 : index
    %c0_42 = arith.constant 0 : index
    %c0_43 = arith.constant 0 : index
    %37 = vector.load %arg1[%c3_40, %c0_41, %c0_42, %c0_43] : memref<4x9x9x3xbf16, #tpu.memory_space<vmem>>, vector<1x1x8x3xbf16>
    %38 = vector.shape_cast %37 : vector<1x1x8x3xbf16> to vector<8x3xbf16>
    %cst_44 = arith.constant dense<0.000000e+00> : vector<8x8xf32>
    %39 = tpu.matmul %38, %9, %cst_44 {dimension_numbers = #tpu.dot_dimension_numbers<[1], [0], [0], [1], [0, 0, 1, 1], [], []>} : vector<8x3xbf16>, vector<3x8xbf16>, vector<8x8xf32> -> vector<8x8xf32>
    %40 = arith.addf %36, %39 : vector<8x8xf32>
    %c2_45 = arith.constant 2 : index
    %c0_46 = arith.constant 0 : index
    %c1_47 = arith.constant 1 : index
    %c0_48 = arith.constant 0 : index
    %41 = vector.load %arg1[%c2_45, %c0_46, %c1_47, %c0_48] : memref<4x9x9x3xbf16, #tpu.memory_space<vmem>>, vector<1x1x8x3xbf16>
    %42 = vector.shape_cast %41 : vector<1x1x8x3xbf16> to vector<8x3xbf16>
    %cst_49 = arith.constant dense<0.000000e+00> : vector<8x8xf32>
    %43 = tpu.matmul %42, %11, %cst_49 {dimension_numbers = #tpu.dot_dimension_numbers<[1], [0], [0], [1], [0, 0, 1, 1], [], []>} : vector<8x3xbf16>, vector<3x8xbf16>, vector<8x8xf32> -> vector<8x8xf32>
    %44 = arith.addf %40, %43 : vector<8x8xf32>
    %c0_50 = arith.constant 0 : index
    %c1_51 = arith.constant 1 : index
    %c0_52 = arith.constant 0 : index
    %c0_53 = arith.constant 0 : index
    %45 = vector.load %arg1[%c0_50, %c1_51, %c0_52, %c0_53] : memref<4x9x9x3xbf16, #tpu.memory_space<vmem>>, vector<1x1x8x3xbf16>
    %46 = vector.shape_cast %45 : vector<1x1x8x3xbf16> to vector<8x3xbf16>
    %cst_54 = arith.constant dense<0.000000e+00> : vector<8x8xf32>
    %47 = tpu.matmul %46, %13, %cst_54 {dimension_numbers = #tpu.dot_dimension_numbers<[1], [0], [0], [1], [0, 0, 1, 1], [], []>} : vector<8x3xbf16>, vector<3x8xbf16>, vector<8x8xf32> -> vector<8x8xf32>
    %48 = arith.addf %44, %47 : vector<8x8xf32>
    %c1_55 = arith.constant 1 : index
    %c1_56 = arith.constant 1 : index
    %c0_57 = arith.constant 0 : index
    %c0_58 = arith.constant 0 : index
    %49 = vector.load %arg1[%c1_55, %c1_56, %c0_57, %c0_58] : memref<4x9x9x3xbf16, #tpu.memory_space<vmem>>, vector<1x1x8x3xbf16>
    %50 = vector.shape_cast %49 : vector<1x1x8x3xbf16> to vector<8x3xbf16>
    %cst_59 = arith.constant dense<0.000000e+00> : vector<8x8xf32>
    %51 = tpu.matmul %50, %15, %cst_59 {dimension_numbers = #tpu.dot_dimension_numbers<[1], [0], [0], [1], [0, 0, 1, 1], [], []>} : vector<8x3xbf16>, vector<3x8xbf16>, vector<8x8xf32> -> vector<8x8xf32>
    %52 = arith.addf %48, %51 : vector<8x8xf32>
    %c0_60 = arith.constant 0 : index
    %c1_61 = arith.constant 1 : index
    %c1_62 = arith.constant 1 : index
    %c0_63 = arith.constant 0 : index
    %53 = vector.load %arg1[%c0_60, %c1_61, %c1_62, %c0_63] : memref<4x9x9x3xbf16, #tpu.memory_space<vmem>>, vector<1x1x8x3xbf16>
    %54 = vector.shape_cast %53 : vector<1x1x8x3xbf16> to vector<8x3xbf16>
    %cst_64 = arith.constant dense<0.000000e+00> : vector<8x8xf32>
    %55 = tpu.matmul %54, %17, %cst_64 {dimension_numbers = #tpu.dot_dimension_numbers<[1], [0], [0], [1], [0, 0, 1, 1], [], []>} : vector<8x3xbf16>, vector<3x8xbf16>, vector<8x8xf32> -> vector<8x8xf32>
    %56 = arith.addf %52, %55 : vector<8x8xf32>
    %57 = arith.truncf %56 : vector<8x8xf32> to vector<8x8xbf16>
    %c0_65 = arith.constant 0 : index
    %c0_66 = arith.constant 0 : index
    %c0_67 = arith.constant 0 : index
    %c0_68 = arith.constant 0 : index
    %58 = vector.load %arg3[%c0_65, %c0_66, %c0_67, %c0_68] : memref<1x8x8x8xbf16, #tpu.memory_space<vmem>>, vector<1x1x8x8xbf16>
    %59 = vector.shape_cast %58 : vector<1x1x8x8xbf16> to vector<8x8xbf16>
    %60 = vector.shape_cast %57 : vector<8x8xbf16> to vector<1x1x8x8xbf16>
    tpu.vector_store %arg3[%c0_65, %c0_66, %c0_67, %c0_68], %60 {strides = array<i32>} : memref<1x8x8x8xbf16, #tpu.memory_space<vmem>>, vector<1x1x8x8xbf16>,
    %cst_69 = arith.constant dense<0.000000e+00> : vector<8xf32>
    %61 = vector.multi_reduction <add>, %56, %cst_69 [0] : vector<8x8xf32> to vector<8xf32>
    %62 = vector.shape_cast %61 : vector<8xf32> to vector<1x8xf32>
    %63 = arith.addf %18, %62 : vector<1x8xf32>
    %64 = arith.mulf %56, %56 : vector<8x8xf32>
    %cst_70 = arith.constant dense<0.000000e+00> : vector<8xf32>
    %65 = vector.multi_reduction <add>, %64, %cst_70 [0] : vector<8x8xf32> to vector<8xf32>
    %66 = vector.shape_cast %65 : vector<8xf32> to vector<1x8xf32>
    %67 = arith.addf %19, %66 : vector<1x8xf32>
    %cst_71 = arith.constant 0.000000e+00 : f32
    %68 = vector.broadcast %cst_71 : f32 to vector<8x8xf32>
    %c0_72 = arith.constant 0 : index
    %c1_73 = arith.constant 1 : index
    %c0_74 = arith.constant 0 : index
    %c0_75 = arith.constant 0 : index
    %69 = vector.load %arg1[%c0_72, %c1_73, %c0_74, %c0_75] : memref<4x9x9x3xbf16, #tpu.memory_space<vmem>>, vector<1x1x8x3xbf16>
    %70 = vector.shape_cast %69 : vector<1x1x8x3xbf16> to vector<8x3xbf16>
    %cst_76 = arith.constant dense<0.000000e+00> : vector<8x8xf32>
    %71 = tpu.matmul %70, %1, %cst_76 {dimension_numbers = #tpu.dot_dimension_numbers<[1], [0], [0], [1], [0, 0, 1, 1], [], []>} : vector<8x3xbf16>, vector<3x8xbf16>, vector<8x8xf32> -> vector<8x8xf32>
    %72 = arith.addf %68, %71 : vector<8x8xf32>
    %c1_77 = arith.constant 1 : index
    %c1_78 = arith.constant 1 : index
    %c0_79 = arith.constant 0 : index
    %c0_80 = arith.constant 0 : index
    %73 = vector.load %arg1[%c1_77, %c1_78, %c0_79, %c0_80] : memref<4x9x9x3xbf16, #tpu.memory_space<vmem>>, vector<1x1x8x3xbf16>
    %74 = vector.shape_cast %73 : vector<1x1x8x3xbf16> to vector<8x3xbf16>
    %cst_81 = arith.constant dense<0.000000e+00> : vector<8x8xf32>
    %75 = tpu.matmul %74, %3, %cst_81 {dimension_numbers = #tpu.dot_dimension_numbers<[1], [0], [0], [1], [0, 0, 1, 1], [], []>} : vector<8x3xbf16>, vector<3x8xbf16>, vector<8x8xf32> -> vector<8x8xf32>
    %76 = arith.addf %72, %75 : vector<8x8xf32>
    %c0_82 = arith.constant 0 : index
    %c1_83 = arith.constant 1 : index
    %c1_84 = arith.constant 1 : index
    %c0_85 = arith.constant 0 : index
    %77 = vector.load %arg1[%c0_82, %c1_83, %c1_84, %c0_85] : memref<4x9x9x3xbf16, #tpu.memory_space<vmem>>, vector<1x1x8x3xbf16>
    %78 = vector.shape_cast %77 : vector<1x1x8x3xbf16> to vector<8x3xbf16>
    %cst_86 = arith.constant dense<0.000000e+00> : vector<8x8xf32>
    %79 = tpu.matmul %78, %5, %cst_86 {dimension_numbers = #tpu.dot_dimension_numbers<[1], [0], [0], [1], [0, 0, 1, 1], [], []>} : vector<8x3xbf16>, vector<3x8xbf16>, vector<8x8xf32> -> vector<8x8xf32>
    %80 = arith.addf %76, %79 : vector<8x8xf32>
    %c2_87 = arith.constant 2 : index
    %c1_88 = arith.constant 1 : index
    %c0_89 = arith.constant 0 : index
    %c0_90 = arith.constant 0 : index
    %81 = vector.load %arg1[%c2_87, %c1_88, %c0_89, %c0_90] : memref<4x9x9x3xbf16, #tpu.memory_space<vmem>>, vector<1x1x8x3xbf16>
    %82 = vector.shape_cast %81 : vector<1x1x8x3xbf16> to vector<8x3xbf16>
    %cst_91 = arith.constant dense<0.000000e+00> : vector<8x8xf32>
    %83 = tpu.matmul %82, %7, %cst_91 {dimension_numbers = #tpu.dot_dimension_numbers<[1], [0], [0], [1], [0, 0, 1, 1], [], []>} : vector<8x3xbf16>, vector<3x8xbf16>, vector<8x8xf32> -> vector<8x8xf32>
    %84 = arith.addf %80, %83 : vector<8x8xf32>
    %c3_92 = arith.constant 3 : index
    %c1_93 = arith.constant 1 : index
    %c0_94 = arith.constant 0 : index
    %c0_95 = arith.constant 0 : index
    %85 = vector.load %arg1[%c3_92, %c1_93, %c0_94, %c0_95] : memref<4x9x9x3xbf16, #tpu.memory_space<vmem>>, vector<1x1x8x3xbf16>
    %86 = vector.shape_cast %85 : vector<1x1x8x3xbf16> to vector<8x3xbf16>
    %cst_96 = arith.constant dense<0.000000e+00> : vector<8x8xf32>
    %87 = tpu.matmul %86, %9, %cst_96 {dimension_numbers = #tpu.dot_dimension_numbers<[1], [0], [0], [1], [0, 0, 1, 1], [], []>} : vector<8x3xbf16>, vector<3x8xbf16>, vector<8x8xf32> -> vector<8x8xf32>
    %88 = arith.addf %84, %87 : vector<8x8xf32>
    %c2_97 = arith.constant 2 : index
    %c1_98 = arith.constant 1 : index
    %c1_99 = arith.constant 1 : index
    %c0_100 = arith.constant 0 : index
    %89 = vector.load %arg1[%c2_97, %c1_98, %c1_99, %c0_100] : memref<4x9x9x3xbf16, #tpu.memory_space<vmem>>, vector<1x1x8x3xbf16>
    %90 = vector.shape_cast %89 : vector<1x1x8x3xbf16> to vector<8x3xbf16>
    %cst_101 = arith.constant dense<0.000000e+00> : vector<8x8xf32>
    %91 = tpu.matmul %90, %11, %cst_101 {dimension_numbers = #tpu.dot_dimension_numbers<[1], [0], [0], [1], [0, 0, 1, 1], [], []>} : vector<8x3xbf16>, vector<3x8xbf16>, vector<8x8xf32> -> vector<8x8xf32>
    %92 = arith.addf %88, %91 : vector<8x8xf32>
    %c0_102 = arith.constant 0 : index
    %c2_103 = arith.constant 2 : index
    %c0_104 = arith.constant 0 : index
    %c0_105 = arith.constant 0 : index
    %93 = vector.load %arg1[%c0_102, %c2_103, %c0_104, %c0_105] : memref<4x9x9x3xbf16, #tpu.memory_space<vmem>>, vector<1x1x8x3xbf16>
    %94 = vector.shape_cast %93 : vector<1x1x8x3xbf16> to vector<8x3xbf16>
    %cst_106 = arith.constant dense<0.000000e+00> : vector<8x8xf32>
    %95 = tpu.matmul %94, %13, %cst_106 {dimension_numbers = #tpu.dot_dimension_numbers<[1], [0], [0], [1], [0, 0, 1, 1], [], []>} : vector<8x3xbf16>, vector<3x8xbf16>, vector<8x8xf32> -> vector<8x8xf32>
    %96 = arith.addf %92, %95 : vector<8x8xf32>
    %c1_107 = arith.constant 1 : index
    %c2_108 = arith.constant 2 : index
    %c0_109 = arith.constant 0 : index
    %c0_110 = arith.constant 0 : index
    %97 = vector.load %arg1[%c1_107, %c2_108, %c0_109, %c0_110] : memref<4x9x9x3xbf16, #tpu.memory_space<vmem>>, vector<1x1x8x3xbf16>
    %98 = vector.shape_cast %97 : vector<1x1x8x3xbf16> to vector<8x3xbf16>
    %cst_111 = arith.constant dense<0.000000e+00> : vector<8x8xf32>
    %99 = tpu.matmul %98, %15, %cst_111 {dimension_numbers = #tpu.dot_dimension_numbers<[1], [0], [0], [1], [0, 0, 1, 1], [], []>} : vector<8x3xbf16>, vector<3x8xbf16>, vector<8x8xf32> -> vector<8x8xf32>
    %100 = arith.addf %96, %99 : vector<8x8xf32>
    %c0_112 = arith.constant 0 : index
    %c2_113 = arith.constant 2 : index
    %c1_114 = arith.constant 1 : index
    %c0_115 = arith.constant 0 : index
    %101 = vector.load %arg1[%c0_112, %c2_113, %c1_114, %c0_115] : memref<4x9x9x3xbf16, #tpu.memory_space<vmem>>, vector<1x1x8x3xbf16>
    %102 = vector.shape_cast %101 : vector<1x1x8x3xbf16> to vector<8x3xbf16>
    %cst_116 = arith.constant dense<0.000000e+00> : vector<8x8xf32>
    %103 = tpu.matmul %102, %17, %cst_116 {dimension_numbers = #tpu.dot_dimension_numbers<[1], [0], [0], [1], [0, 0, 1, 1], [], []>} : vector<8x3xbf16>, vector<3x8xbf16>, vector<8x8xf32> -> vector<8x8xf32>
    %104 = arith.addf %100, %103 : vector<8x8xf32>
    %105 = arith.truncf %104 : vector<8x8xf32> to vector<8x8xbf16>
    %c0_117 = arith.constant 0 : index
    %c1_118 = arith.constant 1 : index
    %c0_119 = arith.constant 0 : index
    %c0_120 = arith.constant 0 : index
    %106 = vector.load %arg3[%c0_117, %c1_118, %c0_119, %c0_120] : memref<1x8x8x8xbf16, #tpu.memory_space<vmem>>, vector<1x1x8x8xbf16>
    %107 = vector.shape_cast %106 : vector<1x1x8x8xbf16> to vector<8x8xbf16>
    %108 = vector.shape_cast %105 : vector<8x8xbf16> to vector<1x1x8x8xbf16>
    tpu.vector_store %arg3[%c0_117, %c1_118, %c0_119, %c0_120], %108 {strides = array<i32>} : memref<1x8x8x8xbf16, #tpu.memory_space<vmem>>, vector<1x1x8x8xbf16>,
    %cst_121 = arith.constant dense<0.000000e+00> : vector<8xf32>
    %109 = vector.multi_reduction <add>, %104, %cst_121 [0] : vector<8x8xf32> to vector<8xf32>
    %110 = vector.shape_cast %109 : vector<8xf32> to vector<1x8xf32>
    %111 = arith.addf %63, %110 : vector<1x8xf32>
    %112 = arith.mulf %104, %104 : vector<8x8xf32>
    %cst_122 = arith.constant dense<0.000000e+00> : vector<8xf32>
    %113 = vector.multi_reduction <add>, %112, %cst_122 [0] : vector<8x8xf32> to vector<8xf32>
    %114 = vector.shape_cast %113 : vector<8xf32> to vector<1x8xf32>
    %115 = arith.addf %67, %114 : vector<1x8xf32>
    %cst_123 = arith.constant 0.000000e+00 : f32
    %116 = vector.broadcast %cst_123 : f32 to vector<8x8xf32>
    %c0_124 = arith.constant 0 : index
    %c2_125 = arith.constant 2 : index
    %c0_126 = arith.constant 0 : index
    %c0_127 = arith.constant 0 : index
    %117 = vector.load %arg1[%c0_124, %c2_125, %c0_126, %c0_127] : memref<4x9x9x3xbf16, #tpu.memory_space<vmem>>, vector<1x1x8x3xbf16>
    %118 = vector.shape_cast %117 : vector<1x1x8x3xbf16> to vector<8x3xbf16>
    %cst_128 = arith.constant dense<0.000000e+00> : vector<8x8xf32>
    %119 = tpu.matmul %118, %1, %cst_128 {dimension_numbers = #tpu.dot_dimension_numbers<[1], [0], [0], [1], [0, 0, 1, 1], [], []>} : vector<8x3xbf16>, vector<3x8xbf16>, vector<8x8xf32> -> vector<8x8xf32>
    %120 = arith.addf %116, %119 : vector<8x8xf32>
    %c1_129 = arith.constant 1 : index
    %c2_130 = arith.constant 2 : index
    %c0_131 = arith.constant 0 : index
    %c0_132 = arith.constant 0 : index
    %121 = vector.load %arg1[%c1_129, %c2_130, %c0_131, %c0_132] : memref<4x9x9x3xbf16, #tpu.memory_space<vmem>>, vector<1x1x8x3xbf16>
    %122 = vector.shape_cast %121 : vector<1x1x8x3xbf16> to vector<8x3xbf16>
    %cst_133 = arith.constant dense<0.000000e+00> : vector<8x8xf32>
    %123 = tpu.matmul %122, %3, %cst_133 {dimension_numbers = #tpu.dot_dimension_numbers<[1], [0], [0], [1], [0, 0, 1, 1], [], []>} : vector<8x3xbf16>, vector<3x8xbf16>, vector<8x8xf32> -> vector<8x8xf32>
    %124 = arith.addf %120, %123 : vector<8x8xf32>
    %c0_134 = arith.constant 0 : index
    %c2_135 = arith.constant 2 : index
    %c1_136 = arith.constant 1 : index
    %c0_137 = arith.constant 0 : index
    %125 = vector.load %arg1[%c0_134, %c2_135, %c1_136, %c0_137] : memref<4x9x9x3xbf16, #tpu.memory_space<vmem>>, vector<1x1x8x3xbf16>
    %126 = vector.shape_cast %125 : vector<1x1x8x3xbf16> to vector<8x3xbf16>
    %cst_138 = arith.constant dense<0.000000e+00> : vector<8x8xf32>
    %127 = tpu.matmul %126, %5, %cst_138 {dimension_numbers = #tpu.dot_dimension_numbers<[1], [0], [0], [1], [0, 0, 1, 1], [], []>} : vector<8x3xbf16>, vector<3x8xbf16>, vector<8x8xf32> -> vector<8x8xf32>
    %128 = arith.addf %124, %127 : vector<8x8xf32>
    %c2_139 = arith.constant 2 : index
    %c2_140 = arith.constant 2 : index
    %c0_141 = arith.constant 0 : index
    %c0_142 = arith.constant 0 : index
    %129 = vector.load %arg1[%c2_139, %c2_140, %c0_141, %c0_142] : memref<4x9x9x3xbf16, #tpu.memory_space<vmem>>, vector<1x1x8x3xbf16>
    %130 = vector.shape_cast %129 : vector<1x1x8x3xbf16> to vector<8x3xbf16>
    %cst_143 = arith.constant dense<0.000000e+00> : vector<8x8xf32>
    %131 = tpu.matmul %130, %7, %cst_143 {dimension_numbers = #tpu.dot_dimension_numbers<[1], [0], [0], [1], [0, 0, 1, 1], [], []>} : vector<8x3xbf16>, vector<3x8xbf16>, vector<8x8xf32> -> vector<8x8xf32>
    %132 = arith.addf %128, %131 : vector<8x8xf32>
    %c3_144 = arith.constant 3 : index
    %c2_145 = arith.constant 2 : index
    %c0_146 = arith.constant 0 : index
    %c0_147 = arith.constant 0 : index
    %133 = vector.load %arg1[%c3_144, %c2_145, %c0_146, %c0_147] : memref<4x9x9x3xbf16, #tpu.memory_space<vmem>>, vector<1x1x8x3xbf16>
    %134 = vector.shape_cast %133 : vector<1x1x8x3xbf16> to vector<8x3xbf16>
    %cst_148 = arith.constant dense<0.000000e+00> : vector<8x8xf32>
    %135 = tpu.matmul %134, %9, %cst_148 {dimension_numbers = #tpu.dot_dimension_numbers<[1], [0], [0], [1], [0, 0, 1, 1], [], []>} : vector<8x3xbf16>, vector<3x8xbf16>, vector<8x8xf32> -> vector<8x8xf32>
    %136 = arith.addf %132, %135 : vector<8x8xf32>
    %c2_149 = arith.constant 2 : index
    %c2_150 = arith.constant 2 : index
    %c1_151 = arith.constant 1 : index
    %c0_152 = arith.constant 0 : index
    %137 = vector.load %arg1[%c2_149, %c2_150, %c1_151, %c0_152] : memref<4x9x9x3xbf16, #tpu.memory_space<vmem>>, vector<1x1x8x3xbf16>
    %138 = vector.shape_cast %137 : vector<1x1x8x3xbf16> to vector<8x3xbf16>
    %cst_153 = arith.constant dense<0.000000e+00> : vector<8x8xf32>
    %139 = tpu.matmul %138, %11, %cst_153 {dimension_numbers = #tpu.dot_dimension_numbers<[1], [0], [0], [1], [0, 0, 1, 1], [], []>} : vector<8x3xbf16>, vector<3x8xbf16>, vector<8x8xf32> -> vector<8x8xf32>
    %140 = arith.addf %136, %139 : vector<8x8xf32>
    %c0_154 = arith.constant 0 : index
    %c3_155 = arith.constant 3 : index
    %c0_156 = arith.constant 0 : index
    %c0_157 = arith.constant 0 : index
    %141 = vector.load %arg1[%c0_154, %c3_155, %c0_156, %c0_157] : memref<4x9x9x3xbf16, #tpu.memory_space<vmem>>, vector<1x1x8x3xbf16>
    %142 = vector.shape_cast %141 : vector<1x1x8x3xbf16> to vector<8x3xbf16>
    %cst_158 = arith.constant dense<0.000000e+00> : vector<8x8xf32>
    %143 = tpu.matmul %142, %13, %cst_158 {dimension_numbers = #tpu.dot_dimension_numbers<[1], [0], [0], [1], [0, 0, 1, 1], [], []>} : vector<8x3xbf16>, vector<3x8xbf16>, vector<8x8xf32> -> vector<8x8xf32>
    %144 = arith.addf %140, %143 : vector<8x8xf32>
    %c1_159 = arith.constant 1 : index
    %c3_160 = arith.constant 3 : index
    %c0_161 = arith.constant 0 : index
    %c0_162 = arith.constant 0 : index
    %145 = vector.load %arg1[%c1_159, %c3_160, %c0_161, %c0_162] : memref<4x9x9x3xbf16, #tpu.memory_space<vmem>>, vector<1x1x8x3xbf16>
    %146 = vector.shape_cast %145 : vector<1x1x8x3xbf16> to vector<8x3xbf16>
    %cst_163 = arith.constant dense<0.000000e+00> : vector<8x8xf32>
    %147 = tpu.matmul %146, %15, %cst_163 {dimension_numbers = #tpu.dot_dimension_numbers<[1], [0], [0], [1], [0, 0, 1, 1], [], []>} : vector<8x3xbf16>, vector<3x8xbf16>, vector<8x8xf32> -> vector<8x8xf32>
    %148 = arith.addf %144, %147 : vector<8x8xf32>
    %c0_164 = arith.constant 0 : index
    %c3_165 = arith.constant 3 : index
    %c1_166 = arith.constant 1 : index
    %c0_167 = arith.constant 0 : index
    %149 = vector.load %arg1[%c0_164, %c3_165, %c1_166, %c0_167] : memref<4x9x9x3xbf16, #tpu.memory_space<vmem>>, vector<1x1x8x3xbf16>
    %150 = vector.shape_cast %149 : vector<1x1x8x3xbf16> to vector<8x3xbf16>
    %cst_168 = arith.constant dense<0.000000e+00> : vector<8x8xf32>
    %151 = tpu.matmul %150, %17, %cst_168 {dimension_numbers = #tpu.dot_dimension_numbers<[1], [0], [0], [1], [0, 0, 1, 1], [], []>} : vector<8x3xbf16>, vector<3x8xbf16>, vector<8x8xf32> -> vector<8x8xf32>
    %152 = arith.addf %148, %151 : vector<8x8xf32>
    %153 = arith.truncf %152 : vector<8x8xf32> to vector<8x8xbf16>
    %c0_169 = arith.constant 0 : index
    %c2_170 = arith.constant 2 : index
    %c0_171 = arith.constant 0 : index
    %c0_172 = arith.constant 0 : index
    %154 = vector.load %arg3[%c0_169, %c2_170, %c0_171, %c0_172] : memref<1x8x8x8xbf16, #tpu.memory_space<vmem>>, vector<1x1x8x8xbf16>
    %155 = vector.shape_cast %154 : vector<1x1x8x8xbf16> to vector<8x8xbf16>
    %156 = vector.shape_cast %153 : vector<8x8xbf16> to vector<1x1x8x8xbf16>
    tpu.vector_store %arg3[%c0_169, %c2_170, %c0_171, %c0_172], %156 {strides = array<i32>} : memref<1x8x8x8xbf16, #tpu.memory_space<vmem>>, vector<1x1x8x8xbf16>,
    %cst_173 = arith.constant dense<0.000000e+00> : vector<8xf32>
    %157 = vector.multi_reduction <add>, %152, %cst_173 [0] : vector<8x8xf32> to vector<8xf32>
    %158 = vector.shape_cast %157 : vector<8xf32> to vector<1x8xf32>
    %159 = arith.addf %111, %158 : vector<1x8xf32>
    %160 = arith.mulf %152, %152 : vector<8x8xf32>
    %cst_174 = arith.constant dense<0.000000e+00> : vector<8xf32>
    %161 = vector.multi_reduction <add>, %160, %cst_174 [0] : vector<8x8xf32> to vector<8xf32>
    %162 = vector.shape_cast %161 : vector<8xf32> to vector<1x8xf32>
    %163 = arith.addf %115, %162 : vector<1x8xf32>
    %cst_175 = arith.constant 0.000000e+00 : f32
    %164 = vector.broadcast %cst_175 : f32 to vector<8x8xf32>
    %c0_176 = arith.constant 0 : index
    %c3_177 = arith.constant 3 : index
    %c0_178 = arith.constant 0 : index
    %c0_179 = arith.constant 0 : index
    %165 = vector.load %arg1[%c0_176, %c3_177, %c0_178, %c0_179] : memref<4x9x9x3xbf16, #tpu.memory_space<vmem>>, vector<1x1x8x3xbf16>
    %166 = vector.shape_cast %165 : vector<1x1x8x3xbf16> to vector<8x3xbf16>
    %cst_180 = arith.constant dense<0.000000e+00> : vector<8x8xf32>
    %167 = tpu.matmul %166, %1, %cst_180 {dimension_numbers = #tpu.dot_dimension_numbers<[1], [0], [0], [1], [0, 0, 1, 1], [], []>} : vector<8x3xbf16>, vector<3x8xbf16>, vector<8x8xf32> -> vector<8x8xf32>
    %168 = arith.addf %164, %167 : vector<8x8xf32>
    %c1_181 = arith.constant 1 : index
    %c3_182 = arith.constant 3 : index
    %c0_183 = arith.constant 0 : index
    %c0_184 = arith.constant 0 : index
    %169 = vector.load %arg1[%c1_181, %c3_182, %c0_183, %c0_184] : memref<4x9x9x3xbf16, #tpu.memory_space<vmem>>, vector<1x1x8x3xbf16>
    %170 = vector.shape_cast %169 : vector<1x1x8x3xbf16> to vector<8x3xbf16>
    %cst_185 = arith.constant dense<0.000000e+00> : vector<8x8xf32>
    %171 = tpu.matmul %170, %3, %cst_185 {dimension_numbers = #tpu.dot_dimension_numbers<[1], [0], [0], [1], [0, 0, 1, 1], [], []>} : vector<8x3xbf16>, vector<3x8xbf16>, vector<8x8xf32> -> vector<8x8xf32>
    %172 = arith.addf %168, %171 : vector<8x8xf32>
    %c0_186 = arith.constant 0 : index
    %c3_187 = arith.constant 3 : index
    %c1_188 = arith.constant 1 : index
    %c0_189 = arith.constant 0 : index
    %173 = vector.load %arg1[%c0_186, %c3_187, %c1_188, %c0_189] : memref<4x9x9x3xbf16, #tpu.memory_space<vmem>>, vector<1x1x8x3xbf16>
    %174 = vector.shape_cast %173 : vector<1x1x8x3xbf16> to vector<8x3xbf16>
    %cst_190 = arith.constant dense<0.000000e+00> : vector<8x8xf32>
    %175 = tpu.matmul %174, %5, %cst_190 {dimension_numbers = #tpu.dot_dimension_numbers<[1], [0], [0], [1], [0, 0, 1, 1], [], []>} : vector<8x3xbf16>, vector<3x8xbf16>, vector<8x8xf32> -> vector<8x8xf32>
    %176 = arith.addf %172, %175 : vector<8x8xf32>
    %c2_191 = arith.constant 2 : index
    %c3_192 = arith.constant 3 : index
    %c0_193 = arith.constant 0 : index
    %c0_194 = arith.constant 0 : index
    %177 = vector.load %arg1[%c2_191, %c3_192, %c0_193, %c0_194] : memref<4x9x9x3xbf16, #tpu.memory_space<vmem>>, vector<1x1x8x3xbf16>
    %178 = vector.shape_cast %177 : vector<1x1x8x3xbf16> to vector<8x3xbf16>
    %cst_195 = arith.constant dense<0.000000e+00> : vector<8x8xf32>
    %179 = tpu.matmul %178, %7, %cst_195 {dimension_numbers = #tpu.dot_dimension_numbers<[1], [0], [0], [1], [0, 0, 1, 1], [], []>} : vector<8x3xbf16>, vector<3x8xbf16>, vector<8x8xf32> -> vector<8x8xf32>
    %180 = arith.addf %176, %179 : vector<8x8xf32>
    %c3_196 = arith.constant 3 : index
    %c3_197 = arith.constant 3 : index
    %c0_198 = arith.constant 0 : index
    %c0_199 = arith.constant 0 : index
    %181 = vector.load %arg1[%c3_196, %c3_197, %c0_198, %c0_199] : memref<4x9x9x3xbf16, #tpu.memory_space<vmem>>, vector<1x1x8x3xbf16>
    %182 = vector.shape_cast %181 : vector<1x1x8x3xbf16> to vector<8x3xbf16>
    %cst_200 = arith.constant dense<0.000000e+00> : vector<8x8xf32>
    %183 = tpu.matmul %182, %9, %cst_200 {dimension_numbers = #tpu.dot_dimension_numbers<[1], [0], [0], [1], [0, 0, 1, 1], [], []>} : vector<8x3xbf16>, vector<3x8xbf16>, vector<8x8xf32> -> vector<8x8xf32>
    %184 = arith.addf %180, %183 : vector<8x8xf32>
    %c2_201 = arith.constant 2 : index
    %c3_202 = arith.constant 3 : index
    %c1_203 = arith.constant 1 : index
    %c0_204 = arith.constant 0 : index
    %185 = vector.load %arg1[%c2_201, %c3_202, %c1_203, %c0_204] : memref<4x9x9x3xbf16, #tpu.memory_space<vmem>>, vector<1x1x8x3xbf16>
    %186 = vector.shape_cast %185 : vector<1x1x8x3xbf16> to vector<8x3xbf16>
    %cst_205 = arith.constant dense<0.000000e+00> : vector<8x8xf32>
    %187 = tpu.matmul %186, %11, %cst_205 {dimension_numbers = #tpu.dot_dimension_numbers<[1], [0], [0], [1], [0, 0, 1, 1], [], []>} : vector<8x3xbf16>, vector<3x8xbf16>, vector<8x8xf32> -> vector<8x8xf32>
    %188 = arith.addf %184, %187 : vector<8x8xf32>
    %c0_206 = arith.constant 0 : index
    %c4_207 = arith.constant 4 : index
    %c0_208 = arith.constant 0 : index
    %c0_209 = arith.constant 0 : index
    %189 = vector.load %arg1[%c0_206, %c4_207, %c0_208, %c0_209] : memref<4x9x9x3xbf16, #tpu.memory_space<vmem>>, vector<1x1x8x3xbf16>
    %190 = vector.shape_cast %189 : vector<1x1x8x3xbf16> to vector<8x3xbf16>
    %cst_210 = arith.constant dense<0.000000e+00> : vector<8x8xf32>
    %191 = tpu.matmul %190, %13, %cst_210 {dimension_numbers = #tpu.dot_dimension_numbers<[1], [0], [0], [1], [0, 0, 1, 1], [], []>} : vector<8x3xbf16>, vector<3x8xbf16>, vector<8x8xf32> -> vector<8x8xf32>
    %192 = arith.addf %188, %191 : vector<8x8xf32>
    %c1_211 = arith.constant 1 : index
    %c4_212 = arith.constant 4 : index
    %c0_213 = arith.constant 0 : index
    %c0_214 = arith.constant 0 : index
    %193 = vector.load %arg1[%c1_211, %c4_212, %c0_213, %c0_214] : memref<4x9x9x3xbf16, #tpu.memory_space<vmem>>, vector<1x1x8x3xbf16>
    %194 = vector.shape_cast %193 : vector<1x1x8x3xbf16> to vector<8x3xbf16>
    %cst_215 = arith.constant dense<0.000000e+00> : vector<8x8xf32>
    %195 = tpu.matmul %194, %15, %cst_215 {dimension_numbers = #tpu.dot_dimension_numbers<[1], [0], [0], [1], [0, 0, 1, 1], [], []>} : vector<8x3xbf16>, vector<3x8xbf16>, vector<8x8xf32> -> vector<8x8xf32>
    %196 = arith.addf %192, %195 : vector<8x8xf32>
    %c0_216 = arith.constant 0 : index
    %c4_217 = arith.constant 4 : index
    %c1_218 = arith.constant 1 : index
    %c0_219 = arith.constant 0 : index
    %197 = vector.load %arg1[%c0_216, %c4_217, %c1_218, %c0_219] : memref<4x9x9x3xbf16, #tpu.memory_space<vmem>>, vector<1x1x8x3xbf16>
    %198 = vector.shape_cast %197 : vector<1x1x8x3xbf16> to vector<8x3xbf16>
    %cst_220 = arith.constant dense<0.000000e+00> : vector<8x8xf32>
    %199 = tpu.matmul %198, %17, %cst_220 {dimension_numbers = #tpu.dot_dimension_numbers<[1], [0], [0], [1], [0, 0, 1, 1], [], []>} : vector<8x3xbf16>, vector<3x8xbf16>, vector<8x8xf32> -> vector<8x8xf32>
    %200 = arith.addf %196, %199 : vector<8x8xf32>
    %201 = arith.truncf %200 : vector<8x8xf32> to vector<8x8xbf16>
    %c0_221 = arith.constant 0 : index
    %c3_222 = arith.constant 3 : index
    %c0_223 = arith.constant 0 : index
    %c0_224 = arith.constant 0 : index
    %202 = vector.load %arg3[%c0_221, %c3_222, %c0_223, %c0_224] : memref<1x8x8x8xbf16, #tpu.memory_space<vmem>>, vector<1x1x8x8xbf16>
    %203 = vector.shape_cast %202 : vector<1x1x8x8xbf16> to vector<8x8xbf16>
    %204 = vector.shape_cast %201 : vector<8x8xbf16> to vector<1x1x8x8xbf16>
    tpu.vector_store %arg3[%c0_221, %c3_222, %c0_223, %c0_224], %204 {strides = array<i32>} : memref<1x8x8x8xbf16, #tpu.memory_space<vmem>>, vector<1x1x8x8xbf16>,
    %cst_225 = arith.constant dense<0.000000e+00> : vector<8xf32>
    %205 = vector.multi_reduction <add>, %200, %cst_225 [0] : vector<8x8xf32> to vector<8xf32>
    %206 = vector.shape_cast %205 : vector<8xf32> to vector<1x8xf32>
    %207 = arith.addf %159, %206 : vector<1x8xf32>
    %208 = arith.mulf %200, %200 : vector<8x8xf32>
    %cst_226 = arith.constant dense<0.000000e+00> : vector<8xf32>
    %209 = vector.multi_reduction <add>, %208, %cst_226 [0] : vector<8x8xf32> to vector<8xf32>
    %210 = vector.shape_cast %209 : vector<8xf32> to vector<1x8xf32>
    %211 = arith.addf %163, %210 : vector<1x8xf32>
    %cst_227 = arith.constant 0.000000e+00 : f32
    %212 = vector.broadcast %cst_227 : f32 to vector<8x8xf32>
    %c0_228 = arith.constant 0 : index
    %c4_229 = arith.constant 4 : index
    %c0_230 = arith.constant 0 : index
    %c0_231 = arith.constant 0 : index
    %213 = vector.load %arg1[%c0_228, %c4_229, %c0_230, %c0_231] : memref<4x9x9x3xbf16, #tpu.memory_space<vmem>>, vector<1x1x8x3xbf16>
    %214 = vector.shape_cast %213 : vector<1x1x8x3xbf16> to vector<8x3xbf16>
    %cst_232 = arith.constant dense<0.000000e+00> : vector<8x8xf32>
    %215 = tpu.matmul %214, %1, %cst_232 {dimension_numbers = #tpu.dot_dimension_numbers<[1], [0], [0], [1], [0, 0, 1, 1], [], []>} : vector<8x3xbf16>, vector<3x8xbf16>, vector<8x8xf32> -> vector<8x8xf32>
    %216 = arith.addf %212, %215 : vector<8x8xf32>
    %c1_233 = arith.constant 1 : index
    %c4_234 = arith.constant 4 : index
    %c0_235 = arith.constant 0 : index
    %c0_236 = arith.constant 0 : index
    %217 = vector.load %arg1[%c1_233, %c4_234, %c0_235, %c0_236] : memref<4x9x9x3xbf16, #tpu.memory_space<vmem>>, vector<1x1x8x3xbf16>
    %218 = vector.shape_cast %217 : vector<1x1x8x3xbf16> to vector<8x3xbf16>
    %cst_237 = arith.constant dense<0.000000e+00> : vector<8x8xf32>
    %219 = tpu.matmul %218, %3, %cst_237 {dimension_numbers = #tpu.dot_dimension_numbers<[1], [0], [0], [1], [0, 0, 1, 1], [], []>} : vector<8x3xbf16>, vector<3x8xbf16>, vector<8x8xf32> -> vector<8x8xf32>
    %220 = arith.addf %216, %219 : vector<8x8xf32>
    %c0_238 = arith.constant 0 : index
    %c4_239 = arith.constant 4 : index
    %c1_240 = arith.constant 1 : index
    %c0_241 = arith.constant 0 : index
    %221 = vector.load %arg1[%c0_238, %c4_239, %c1_240, %c0_241] : memref<4x9x9x3xbf16, #tpu.memory_space<vmem>>, vector<1x1x8x3xbf16>
    %222 = vector.shape_cast %221 : vector<1x1x8x3xbf16> to vector<8x3xbf16>
    %cst_242 = arith.constant dense<0.000000e+00> : vector<8x8xf32>
    %223 = tpu.matmul %222, %5, %cst_242 {dimension_numbers = #tpu.dot_dimension_numbers<[1], [0], [0], [1], [0, 0, 1, 1], [], []>} : vector<8x3xbf16>, vector<3x8xbf16>, vector<8x8xf32> -> vector<8x8xf32>
    %224 = arith.addf %220, %223 : vector<8x8xf32>
    %c2_243 = arith.constant 2 : index
    %c4_244 = arith.constant 4 : index
    %c0_245 = arith.constant 0 : index
    %c0_246 = arith.constant 0 : index
    %225 = vector.load %arg1[%c2_243, %c4_244, %c0_245, %c0_246] : memref<4x9x9x3xbf16, #tpu.memory_space<vmem>>, vector<1x1x8x3xbf16>
    %226 = vector.shape_cast %225 : vector<1x1x8x3xbf16> to vector<8x3xbf16>
    %cst_247 = arith.constant dense<0.000000e+00> : vector<8x8xf32>
    %227 = tpu.matmul %226, %7, %cst_247 {dimension_numbers = #tpu.dot_dimension_numbers<[1], [0], [0], [1], [0, 0, 1, 1], [], []>} : vector<8x3xbf16>, vector<3x8xbf16>, vector<8x8xf32> -> vector<8x8xf32>
    %228 = arith.addf %224, %227 : vector<8x8xf32>
    %c3_248 = arith.constant 3 : index
    %c4_249 = arith.constant 4 : index
    %c0_250 = arith.constant 0 : index
    %c0_251 = arith.constant 0 : index
    %229 = vector.load %arg1[%c3_248, %c4_249, %c0_250, %c0_251] : memref<4x9x9x3xbf16, #tpu.memory_space<vmem>>, vector<1x1x8x3xbf16>
    %230 = vector.shape_cast %229 : vector<1x1x8x3xbf16> to vector<8x3xbf16>
    %cst_252 = arith.constant dense<0.000000e+00> : vector<8x8xf32>
    %231 = tpu.matmul %230, %9, %cst_252 {dimension_numbers = #tpu.dot_dimension_numbers<[1], [0], [0], [1], [0, 0, 1, 1], [], []>} : vector<8x3xbf16>, vector<3x8xbf16>, vector<8x8xf32> -> vector<8x8xf32>
    %232 = arith.addf %228, %231 : vector<8x8xf32>
    %c2_253 = arith.constant 2 : index
    %c4_254 = arith.constant 4 : index
    %c1_255 = arith.constant 1 : index
    %c0_256 = arith.constant 0 : index
    %233 = vector.load %arg1[%c2_253, %c4_254, %c1_255, %c0_256] : memref<4x9x9x3xbf16, #tpu.memory_space<vmem>>, vector<1x1x8x3xbf16>
    %234 = vector.shape_cast %233 : vector<1x1x8x3xbf16> to vector<8x3xbf16>
    %cst_257 = arith.constant dense<0.000000e+00> : vector<8x8xf32>
    %235 = tpu.matmul %234, %11, %cst_257 {dimension_numbers = #tpu.dot_dimension_numbers<[1], [0], [0], [1], [0, 0, 1, 1], [], []>} : vector<8x3xbf16>, vector<3x8xbf16>, vector<8x8xf32> -> vector<8x8xf32>
    %236 = arith.addf %232, %235 : vector<8x8xf32>
    %c0_258 = arith.constant 0 : index
    %c5_259 = arith.constant 5 : index
    %c0_260 = arith.constant 0 : index
    %c0_261 = arith.constant 0 : index
    %237 = vector.load %arg1[%c0_258, %c5_259, %c0_260, %c0_261] : memref<4x9x9x3xbf16, #tpu.memory_space<vmem>>, vector<1x1x8x3xbf16>
    %238 = vector.shape_cast %237 : vector<1x1x8x3xbf16> to vector<8x3xbf16>
    %cst_262 = arith.constant dense<0.000000e+00> : vector<8x8xf32>
    %239 = tpu.matmul %238, %13, %cst_262 {dimension_numbers = #tpu.dot_dimension_numbers<[1], [0], [0], [1], [0, 0, 1, 1], [], []>} : vector<8x3xbf16>, vector<3x8xbf16>, vector<8x8xf32> -> vector<8x8xf32>
    %240 = arith.addf %236, %239 : vector<8x8xf32>
    %c1_263 = arith.constant 1 : index
    %c5_264 = arith.constant 5 : index
    %c0_265 = arith.constant 0 : index
    %c0_266 = arith.constant 0 : index
    %241 = vector.load %arg1[%c1_263, %c5_264, %c0_265, %c0_266] : memref<4x9x9x3xbf16, #tpu.memory_space<vmem>>, vector<1x1x8x3xbf16>
    %242 = vector.shape_cast %241 : vector<1x1x8x3xbf16> to vector<8x3xbf16>
    %cst_267 = arith.constant dense<0.000000e+00> : vector<8x8xf32>
    %243 = tpu.matmul %242, %15, %cst_267 {dimension_numbers = #tpu.dot_dimension_numbers<[1], [0], [0], [1], [0, 0, 1, 1], [], []>} : vector<8x3xbf16>, vector<3x8xbf16>, vector<8x8xf32> -> vector<8x8xf32>
    %244 = arith.addf %240, %243 : vector<8x8xf32>
    %c0_268 = arith.constant 0 : index
    %c5_269 = arith.constant 5 : index
    %c1_270 = arith.constant 1 : index
    %c0_271 = arith.constant 0 : index
    %245 = vector.load %arg1[%c0_268, %c5_269, %c1_270, %c0_271] : memref<4x9x9x3xbf16, #tpu.memory_space<vmem>>, vector<1x1x8x3xbf16>
    %246 = vector.shape_cast %245 : vector<1x1x8x3xbf16> to vector<8x3xbf16>
    %cst_272 = arith.constant dense<0.000000e+00> : vector<8x8xf32>
    %247 = tpu.matmul %246, %17, %cst_272 {dimension_numbers = #tpu.dot_dimension_numbers<[1], [0], [0], [1], [0, 0, 1, 1], [], []>} : vector<8x3xbf16>, vector<3x8xbf16>, vector<8x8xf32> -> vector<8x8xf32>
    %248 = arith.addf %244, %247 : vector<8x8xf32>
    %249 = arith.truncf %248 : vector<8x8xf32> to vector<8x8xbf16>
    %c0_273 = arith.constant 0 : index
    %c4_274 = arith.constant 4 : index
    %c0_275 = arith.constant 0 : index
    %c0_276 = arith.constant 0 : index
    %250 = vector.load %arg3[%c0_273, %c4_274, %c0_275, %c0_276] : memref<1x8x8x8xbf16, #tpu.memory_space<vmem>>, vector<1x1x8x8xbf16>
    %251 = vector.shape_cast %250 : vector<1x1x8x8xbf16> to vector<8x8xbf16>
    %252 = vector.shape_cast %249 : vector<8x8xbf16> to vector<1x1x8x8xbf16>
    tpu.vector_store %arg3[%c0_273, %c4_274, %c0_275, %c0_276], %252 {strides = array<i32>} : memref<1x8x8x8xbf16, #tpu.memory_space<vmem>>, vector<1x1x8x8xbf16>,
    %cst_277 = arith.constant dense<0.000000e+00> : vector<8xf32>
    %253 = vector.multi_reduction <add>, %248, %cst_277 [0] : vector<8x8xf32> to vector<8xf32>
    %254 = vector.shape_cast %253 : vector<8xf32> to vector<1x8xf32>
    %255 = arith.addf %207, %254 : vector<1x8xf32>
    %256 = arith.mulf %248, %248 : vector<8x8xf32>
    %cst_278 = arith.constant dense<0.000000e+00> : vector<8xf32>
    %257 = vector.multi_reduction <add>, %256, %cst_278 [0] : vector<8x8xf32> to vector<8xf32>
    %258 = vector.shape_cast %257 : vector<8xf32> to vector<1x8xf32>
    %259 = arith.addf %211, %258 : vector<1x8xf32>
    %cst_279 = arith.constant 0.000000e+00 : f32
    %260 = vector.broadcast %cst_279 : f32 to vector<8x8xf32>
    %c0_280 = arith.constant 0 : index
    %c5_281 = arith.constant 5 : index
    %c0_282 = arith.constant 0 : index
    %c0_283 = arith.constant 0 : index
    %261 = vector.load %arg1[%c0_280, %c5_281, %c0_282, %c0_283] : memref<4x9x9x3xbf16, #tpu.memory_space<vmem>>, vector<1x1x8x3xbf16>
    %262 = vector.shape_cast %261 : vector<1x1x8x3xbf16> to vector<8x3xbf16>
    %cst_284 = arith.constant dense<0.000000e+00> : vector<8x8xf32>
    %263 = tpu.matmul %262, %1, %cst_284 {dimension_numbers = #tpu.dot_dimension_numbers<[1], [0], [0], [1], [0, 0, 1, 1], [], []>} : vector<8x3xbf16>, vector<3x8xbf16>, vector<8x8xf32> -> vector<8x8xf32>
    %264 = arith.addf %260, %263 : vector<8x8xf32>
    %c1_285 = arith.constant 1 : index
    %c5_286 = arith.constant 5 : index
    %c0_287 = arith.constant 0 : index
    %c0_288 = arith.constant 0 : index
    %265 = vector.load %arg1[%c1_285, %c5_286, %c0_287, %c0_288] : memref<4x9x9x3xbf16, #tpu.memory_space<vmem>>, vector<1x1x8x3xbf16>
    %266 = vector.shape_cast %265 : vector<1x1x8x3xbf16> to vector<8x3xbf16>
    %cst_289 = arith.constant dense<0.000000e+00> : vector<8x8xf32>
    %267 = tpu.matmul %266, %3, %cst_289 {dimension_numbers = #tpu.dot_dimension_numbers<[1], [0], [0], [1], [0, 0, 1, 1], [], []>} : vector<8x3xbf16>, vector<3x8xbf16>, vector<8x8xf32> -> vector<8x8xf32>
    %268 = arith.addf %264, %267 : vector<8x8xf32>
    %c0_290 = arith.constant 0 : index
    %c5_291 = arith.constant 5 : index
    %c1_292 = arith.constant 1 : index
    %c0_293 = arith.constant 0 : index
    %269 = vector.load %arg1[%c0_290, %c5_291, %c1_292, %c0_293] : memref<4x9x9x3xbf16, #tpu.memory_space<vmem>>, vector<1x1x8x3xbf16>
    %270 = vector.shape_cast %269 : vector<1x1x8x3xbf16> to vector<8x3xbf16>
    %cst_294 = arith.constant dense<0.000000e+00> : vector<8x8xf32>
    %271 = tpu.matmul %270, %5, %cst_294 {dimension_numbers = #tpu.dot_dimension_numbers<[1], [0], [0], [1], [0, 0, 1, 1], [], []>} : vector<8x3xbf16>, vector<3x8xbf16>, vector<8x8xf32> -> vector<8x8xf32>
    %272 = arith.addf %268, %271 : vector<8x8xf32>
    %c2_295 = arith.constant 2 : index
    %c5_296 = arith.constant 5 : index
    %c0_297 = arith.constant 0 : index
    %c0_298 = arith.constant 0 : index
    %273 = vector.load %arg1[%c2_295, %c5_296, %c0_297, %c0_298] : memref<4x9x9x3xbf16, #tpu.memory_space<vmem>>, vector<1x1x8x3xbf16>
    %274 = vector.shape_cast %273 : vector<1x1x8x3xbf16> to vector<8x3xbf16>
    %cst_299 = arith.constant dense<0.000000e+00> : vector<8x8xf32>
    %275 = tpu.matmul %274, %7, %cst_299 {dimension_numbers = #tpu.dot_dimension_numbers<[1], [0], [0], [1], [0, 0, 1, 1], [], []>} : vector<8x3xbf16>, vector<3x8xbf16>, vector<8x8xf32> -> vector<8x8xf32>
    %276 = arith.addf %272, %275 : vector<8x8xf32>
    %c3_300 = arith.constant 3 : index
    %c5_301 = arith.constant 5 : index
    %c0_302 = arith.constant 0 : index
    %c0_303 = arith.constant 0 : index
    %277 = vector.load %arg1[%c3_300, %c5_301, %c0_302, %c0_303] : memref<4x9x9x3xbf16, #tpu.memory_space<vmem>>, vector<1x1x8x3xbf16>
    %278 = vector.shape_cast %277 : vector<1x1x8x3xbf16> to vector<8x3xbf16>
    %cst_304 = arith.constant dense<0.000000e+00> : vector<8x8xf32>
    %279 = tpu.matmul %278, %9, %cst_304 {dimension_numbers = #tpu.dot_dimension_numbers<[1], [0], [0], [1], [0, 0, 1, 1], [], []>} : vector<8x3xbf16>, vector<3x8xbf16>, vector<8x8xf32> -> vector<8x8xf32>
    %280 = arith.addf %276, %279 : vector<8x8xf32>
    %c2_305 = arith.constant 2 : index
    %c5_306 = arith.constant 5 : index
    %c1_307 = arith.constant 1 : index
    %c0_308 = arith.constant 0 : index
    %281 = vector.load %arg1[%c2_305, %c5_306, %c1_307, %c0_308] : memref<4x9x9x3xbf16, #tpu.memory_space<vmem>>, vector<1x1x8x3xbf16>
    %282 = vector.shape_cast %281 : vector<1x1x8x3xbf16> to vector<8x3xbf16>
    %cst_309 = arith.constant dense<0.000000e+00> : vector<8x8xf32>
    %283 = tpu.matmul %282, %11, %cst_309 {dimension_numbers = #tpu.dot_dimension_numbers<[1], [0], [0], [1], [0, 0, 1, 1], [], []>} : vector<8x3xbf16>, vector<3x8xbf16>, vector<8x8xf32> -> vector<8x8xf32>
    %284 = arith.addf %280, %283 : vector<8x8xf32>
    %c0_310 = arith.constant 0 : index
    %c6_311 = arith.constant 6 : index
    %c0_312 = arith.constant 0 : index
    %c0_313 = arith.constant 0 : index
    %285 = vector.load %arg1[%c0_310, %c6_311, %c0_312, %c0_313] : memref<4x9x9x3xbf16, #tpu.memory_space<vmem>>, vector<1x1x8x3xbf16>
    %286 = vector.shape_cast %285 : vector<1x1x8x3xbf16> to vector<8x3xbf16>
    %cst_314 = arith.constant dense<0.000000e+00> : vector<8x8xf32>
    %287 = tpu.matmul %286, %13, %cst_314 {dimension_numbers = #tpu.dot_dimension_numbers<[1], [0], [0], [1], [0, 0, 1, 1], [], []>} : vector<8x3xbf16>, vector<3x8xbf16>, vector<8x8xf32> -> vector<8x8xf32>
    %288 = arith.addf %284, %287 : vector<8x8xf32>
    %c1_315 = arith.constant 1 : index
    %c6_316 = arith.constant 6 : index
    %c0_317 = arith.constant 0 : index
    %c0_318 = arith.constant 0 : index
    %289 = vector.load %arg1[%c1_315, %c6_316, %c0_317, %c0_318] : memref<4x9x9x3xbf16, #tpu.memory_space<vmem>>, vector<1x1x8x3xbf16>
    %290 = vector.shape_cast %289 : vector<1x1x8x3xbf16> to vector<8x3xbf16>
    %cst_319 = arith.constant dense<0.000000e+00> : vector<8x8xf32>
    %291 = tpu.matmul %290, %15, %cst_319 {dimension_numbers = #tpu.dot_dimension_numbers<[1], [0], [0], [1], [0, 0, 1, 1], [], []>} : vector<8x3xbf16>, vector<3x8xbf16>, vector<8x8xf32> -> vector<8x8xf32>
    %292 = arith.addf %288, %291 : vector<8x8xf32>
    %c0_320 = arith.constant 0 : index
    %c6_321 = arith.constant 6 : index
    %c1_322 = arith.constant 1 : index
    %c0_323 = arith.constant 0 : index
    %293 = vector.load %arg1[%c0_320, %c6_321, %c1_322, %c0_323] : memref<4x9x9x3xbf16, #tpu.memory_space<vmem>>, vector<1x1x8x3xbf16>
    %294 = vector.shape_cast %293 : vector<1x1x8x3xbf16> to vector<8x3xbf16>
    %cst_324 = arith.constant dense<0.000000e+00> : vector<8x8xf32>
    %295 = tpu.matmul %294, %17, %cst_324 {dimension_numbers = #tpu.dot_dimension_numbers<[1], [0], [0], [1], [0, 0, 1, 1], [], []>} : vector<8x3xbf16>, vector<3x8xbf16>, vector<8x8xf32> -> vector<8x8xf32>
    %296 = arith.addf %292, %295 : vector<8x8xf32>
    %297 = arith.truncf %296 : vector<8x8xf32> to vector<8x8xbf16>
    %c0_325 = arith.constant 0 : index
    %c5_326 = arith.constant 5 : index
    %c0_327 = arith.constant 0 : index
    %c0_328 = arith.constant 0 : index
    %298 = vector.load %arg3[%c0_325, %c5_326, %c0_327, %c0_328] : memref<1x8x8x8xbf16, #tpu.memory_space<vmem>>, vector<1x1x8x8xbf16>
    %299 = vector.shape_cast %298 : vector<1x1x8x8xbf16> to vector<8x8xbf16>
    %300 = vector.shape_cast %297 : vector<8x8xbf16> to vector<1x1x8x8xbf16>
    tpu.vector_store %arg3[%c0_325, %c5_326, %c0_327, %c0_328], %300 {strides = array<i32>} : memref<1x8x8x8xbf16, #tpu.memory_space<vmem>>, vector<1x1x8x8xbf16>,
    %cst_329 = arith.constant dense<0.000000e+00> : vector<8xf32>
    %301 = vector.multi_reduction <add>, %296, %cst_329 [0] : vector<8x8xf32> to vector<8xf32>
    %302 = vector.shape_cast %301 : vector<8xf32> to vector<1x8xf32>
    %303 = arith.addf %255, %302 : vector<1x8xf32>
    %304 = arith.mulf %296, %296 : vector<8x8xf32>
    %cst_330 = arith.constant dense<0.000000e+00> : vector<8xf32>
    %305 = vector.multi_reduction <add>, %304, %cst_330 [0] : vector<8x8xf32> to vector<8xf32>
    %306 = vector.shape_cast %305 : vector<8xf32> to vector<1x8xf32>
    %307 = arith.addf %259, %306 : vector<1x8xf32>
    %cst_331 = arith.constant 0.000000e+00 : f32
    %308 = vector.broadcast %cst_331 : f32 to vector<8x8xf32>
    %c0_332 = arith.constant 0 : index
    %c6_333 = arith.constant 6 : index
    %c0_334 = arith.constant 0 : index
    %c0_335 = arith.constant 0 : index
    %309 = vector.load %arg1[%c0_332, %c6_333, %c0_334, %c0_335] : memref<4x9x9x3xbf16, #tpu.memory_space<vmem>>, vector<1x1x8x3xbf16>
    %310 = vector.shape_cast %309 : vector<1x1x8x3xbf16> to vector<8x3xbf16>
    %cst_336 = arith.constant dense<0.000000e+00> : vector<8x8xf32>
    %311 = tpu.matmul %310, %1, %cst_336 {dimension_numbers = #tpu.dot_dimension_numbers<[1], [0], [0], [1], [0, 0, 1, 1], [], []>} : vector<8x3xbf16>, vector<3x8xbf16>, vector<8x8xf32> -> vector<8x8xf32>
    %312 = arith.addf %308, %311 : vector<8x8xf32>
    %c1_337 = arith.constant 1 : index
    %c6_338 = arith.constant 6 : index
    %c0_339 = arith.constant 0 : index
    %c0_340 = arith.constant 0 : index
    %313 = vector.load %arg1[%c1_337, %c6_338, %c0_339, %c0_340] : memref<4x9x9x3xbf16, #tpu.memory_space<vmem>>, vector<1x1x8x3xbf16>
    %314 = vector.shape_cast %313 : vector<1x1x8x3xbf16> to vector<8x3xbf16>
    %cst_341 = arith.constant dense<0.000000e+00> : vector<8x8xf32>
    %315 = tpu.matmul %314, %3, %cst_341 {dimension_numbers = #tpu.dot_dimension_numbers<[1], [0], [0], [1], [0, 0, 1, 1], [], []>} : vector<8x3xbf16>, vector<3x8xbf16>, vector<8x8xf32> -> vector<8x8xf32>
    %316 = arith.addf %312, %315 : vector<8x8xf32>
    %c0_342 = arith.constant 0 : index
    %c6_343 = arith.constant 6 : index
    %c1_344 = arith.constant 1 : index
    %c0_345 = arith.constant 0 : index
    %317 = vector.load %arg1[%c0_342, %c6_343, %c1_344, %c0_345] : memref<4x9x9x3xbf16, #tpu.memory_space<vmem>>, vector<1x1x8x3xbf16>
    %318 = vector.shape_cast %317 : vector<1x1x8x3xbf16> to vector<8x3xbf16>
    %cst_346 = arith.constant dense<0.000000e+00> : vector<8x8xf32>
    %319 = tpu.matmul %318, %5, %cst_346 {dimension_numbers = #tpu.dot_dimension_numbers<[1], [0], [0], [1], [0, 0, 1, 1], [], []>} : vector<8x3xbf16>, vector<3x8xbf16>, vector<8x8xf32> -> vector<8x8xf32>
    %320 = arith.addf %316, %319 : vector<8x8xf32>
    %c2_347 = arith.constant 2 : index
    %c6_348 = arith.constant 6 : index
    %c0_349 = arith.constant 0 : index
    %c0_350 = arith.constant 0 : index
    %321 = vector.load %arg1[%c2_347, %c6_348, %c0_349, %c0_350] : memref<4x9x9x3xbf16, #tpu.memory_space<vmem>>, vector<1x1x8x3xbf16>
    %322 = vector.shape_cast %321 : vector<1x1x8x3xbf16> to vector<8x3xbf16>
    %cst_351 = arith.constant dense<0.000000e+00> : vector<8x8xf32>
    %323 = tpu.matmul %322, %7, %cst_351 {dimension_numbers = #tpu.dot_dimension_numbers<[1], [0], [0], [1], [0, 0, 1, 1], [], []>} : vector<8x3xbf16>, vector<3x8xbf16>, vector<8x8xf32> -> vector<8x8xf32>
    %324 = arith.addf %320, %323 : vector<8x8xf32>
    %c3_352 = arith.constant 3 : index
    %c6_353 = arith.constant 6 : index
    %c0_354 = arith.constant 0 : index
    %c0_355 = arith.constant 0 : index
    %325 = vector.load %arg1[%c3_352, %c6_353, %c0_354, %c0_355] : memref<4x9x9x3xbf16, #tpu.memory_space<vmem>>, vector<1x1x8x3xbf16>
    %326 = vector.shape_cast %325 : vector<1x1x8x3xbf16> to vector<8x3xbf16>
    %cst_356 = arith.constant dense<0.000000e+00> : vector<8x8xf32>
    %327 = tpu.matmul %326, %9, %cst_356 {dimension_numbers = #tpu.dot_dimension_numbers<[1], [0], [0], [1], [0, 0, 1, 1], [], []>} : vector<8x3xbf16>, vector<3x8xbf16>, vector<8x8xf32> -> vector<8x8xf32>
    %328 = arith.addf %324, %327 : vector<8x8xf32>
    %c2_357 = arith.constant 2 : index
    %c6_358 = arith.constant 6 : index
    %c1_359 = arith.constant 1 : index
    %c0_360 = arith.constant 0 : index
    %329 = vector.load %arg1[%c2_357, %c6_358, %c1_359, %c0_360] : memref<4x9x9x3xbf16, #tpu.memory_space<vmem>>, vector<1x1x8x3xbf16>
    %330 = vector.shape_cast %329 : vector<1x1x8x3xbf16> to vector<8x3xbf16>
    %cst_361 = arith.constant dense<0.000000e+00> : vector<8x8xf32>
    %331 = tpu.matmul %330, %11, %cst_361 {dimension_numbers = #tpu.dot_dimension_numbers<[1], [0], [0], [1], [0, 0, 1, 1], [], []>} : vector<8x3xbf16>, vector<3x8xbf16>, vector<8x8xf32> -> vector<8x8xf32>
    %332 = arith.addf %328, %331 : vector<8x8xf32>
    %c0_362 = arith.constant 0 : index
    %c7_363 = arith.constant 7 : index
    %c0_364 = arith.constant 0 : index
    %c0_365 = arith.constant 0 : index
    %333 = vector.load %arg1[%c0_362, %c7_363, %c0_364, %c0_365] : memref<4x9x9x3xbf16, #tpu.memory_space<vmem>>, vector<1x1x8x3xbf16>
    %334 = vector.shape_cast %333 : vector<1x1x8x3xbf16> to vector<8x3xbf16>
    %cst_366 = arith.constant dense<0.000000e+00> : vector<8x8xf32>
    %335 = tpu.matmul %334, %13, %cst_366 {dimension_numbers = #tpu.dot_dimension_numbers<[1], [0], [0], [1], [0, 0, 1, 1], [], []>} : vector<8x3xbf16>, vector<3x8xbf16>, vector<8x8xf32> -> vector<8x8xf32>
    %336 = arith.addf %332, %335 : vector<8x8xf32>
    %c1_367 = arith.constant 1 : index
    %c7_368 = arith.constant 7 : index
    %c0_369 = arith.constant 0 : index
    %c0_370 = arith.constant 0 : index
    %337 = vector.load %arg1[%c1_367, %c7_368, %c0_369, %c0_370] : memref<4x9x9x3xbf16, #tpu.memory_space<vmem>>, vector<1x1x8x3xbf16>
    %338 = vector.shape_cast %337 : vector<1x1x8x3xbf16> to vector<8x3xbf16>
    %cst_371 = arith.constant dense<0.000000e+00> : vector<8x8xf32>
    %339 = tpu.matmul %338, %15, %cst_371 {dimension_numbers = #tpu.dot_dimension_numbers<[1], [0], [0], [1], [0, 0, 1, 1], [], []>} : vector<8x3xbf16>, vector<3x8xbf16>, vector<8x8xf32> -> vector<8x8xf32>
    %340 = arith.addf %336, %339 : vector<8x8xf32>
    %c0_372 = arith.constant 0 : index
    %c7_373 = arith.constant 7 : index
    %c1_374 = arith.constant 1 : index
    %c0_375 = arith.constant 0 : index
    %341 = vector.load %arg1[%c0_372, %c7_373, %c1_374, %c0_375] : memref<4x9x9x3xbf16, #tpu.memory_space<vmem>>, vector<1x1x8x3xbf16>
    %342 = vector.shape_cast %341 : vector<1x1x8x3xbf16> to vector<8x3xbf16>
    %cst_376 = arith.constant dense<0.000000e+00> : vector<8x8xf32>
    %343 = tpu.matmul %342, %17, %cst_376 {dimension_numbers = #tpu.dot_dimension_numbers<[1], [0], [0], [1], [0, 0, 1, 1], [], []>} : vector<8x3xbf16>, vector<3x8xbf16>, vector<8x8xf32> -> vector<8x8xf32>
    %344 = arith.addf %340, %343 : vector<8x8xf32>
    %345 = arith.truncf %344 : vector<8x8xf32> to vector<8x8xbf16>
    %c0_377 = arith.constant 0 : index
    %c6_378 = arith.constant 6 : index
    %c0_379 = arith.constant 0 : index
    %c0_380 = arith.constant 0 : index
    %346 = vector.load %arg3[%c0_377, %c6_378, %c0_379, %c0_380] : memref<1x8x8x8xbf16, #tpu.memory_space<vmem>>, vector<1x1x8x8xbf16>
    %347 = vector.shape_cast %346 : vector<1x1x8x8xbf16> to vector<8x8xbf16>
    %348 = vector.shape_cast %345 : vector<8x8xbf16> to vector<1x1x8x8xbf16>
    tpu.vector_store %arg3[%c0_377, %c6_378, %c0_379, %c0_380], %348 {strides = array<i32>} : memref<1x8x8x8xbf16, #tpu.memory_space<vmem>>, vector<1x1x8x8xbf16>,
    %cst_381 = arith.constant dense<0.000000e+00> : vector<8xf32>
    %349 = vector.multi_reduction <add>, %344, %cst_381 [0] : vector<8x8xf32> to vector<8xf32>
    %350 = vector.shape_cast %349 : vector<8xf32> to vector<1x8xf32>
    %351 = arith.addf %303, %350 : vector<1x8xf32>
    %352 = arith.mulf %344, %344 : vector<8x8xf32>
    %cst_382 = arith.constant dense<0.000000e+00> : vector<8xf32>
    %353 = vector.multi_reduction <add>, %352, %cst_382 [0] : vector<8x8xf32> to vector<8xf32>
    %354 = vector.shape_cast %353 : vector<8xf32> to vector<1x8xf32>
    %355 = arith.addf %307, %354 : vector<1x8xf32>
    %cst_383 = arith.constant 0.000000e+00 : f32
    %356 = vector.broadcast %cst_383 : f32 to vector<8x8xf32>
    %c0_384 = arith.constant 0 : index
    %c7_385 = arith.constant 7 : index
    %c0_386 = arith.constant 0 : index
    %c0_387 = arith.constant 0 : index
    %357 = vector.load %arg1[%c0_384, %c7_385, %c0_386, %c0_387] : memref<4x9x9x3xbf16, #tpu.memory_space<vmem>>, vector<1x1x8x3xbf16>
    %358 = vector.shape_cast %357 : vector<1x1x8x3xbf16> to vector<8x3xbf16>
    %cst_388 = arith.constant dense<0.000000e+00> : vector<8x8xf32>
    %359 = tpu.matmul %358, %1, %cst_388 {dimension_numbers = #tpu.dot_dimension_numbers<[1], [0], [0], [1], [0, 0, 1, 1], [], []>} : vector<8x3xbf16>, vector<3x8xbf16>, vector<8x8xf32> -> vector<8x8xf32>
    %360 = arith.addf %356, %359 : vector<8x8xf32>
    %c1_389 = arith.constant 1 : index
    %c7_390 = arith.constant 7 : index
    %c0_391 = arith.constant 0 : index
    %c0_392 = arith.constant 0 : index
    %361 = vector.load %arg1[%c1_389, %c7_390, %c0_391, %c0_392] : memref<4x9x9x3xbf16, #tpu.memory_space<vmem>>, vector<1x1x8x3xbf16>
    %362 = vector.shape_cast %361 : vector<1x1x8x3xbf16> to vector<8x3xbf16>
    %cst_393 = arith.constant dense<0.000000e+00> : vector<8x8xf32>
    %363 = tpu.matmul %362, %3, %cst_393 {dimension_numbers = #tpu.dot_dimension_numbers<[1], [0], [0], [1], [0, 0, 1, 1], [], []>} : vector<8x3xbf16>, vector<3x8xbf16>, vector<8x8xf32> -> vector<8x8xf32>
    %364 = arith.addf %360, %363 : vector<8x8xf32>
    %c0_394 = arith.constant 0 : index
    %c7_395 = arith.constant 7 : index
    %c1_396 = arith.constant 1 : index
    %c0_397 = arith.constant 0 : index
    %365 = vector.load %arg1[%c0_394, %c7_395, %c1_396, %c0_397] : memref<4x9x9x3xbf16, #tpu.memory_space<vmem>>, vector<1x1x8x3xbf16>
    %366 = vector.shape_cast %365 : vector<1x1x8x3xbf16> to vector<8x3xbf16>
    %cst_398 = arith.constant dense<0.000000e+00> : vector<8x8xf32>
    %367 = tpu.matmul %366, %5, %cst_398 {dimension_numbers = #tpu.dot_dimension_numbers<[1], [0], [0], [1], [0, 0, 1, 1], [], []>} : vector<8x3xbf16>, vector<3x8xbf16>, vector<8x8xf32> -> vector<8x8xf32>
    %368 = arith.addf %364, %367 : vector<8x8xf32>
    %c2_399 = arith.constant 2 : index
    %c7_400 = arith.constant 7 : index
    %c0_401 = arith.constant 0 : index
    %c0_402 = arith.constant 0 : index
    %369 = vector.load %arg1[%c2_399, %c7_400, %c0_401, %c0_402] : memref<4x9x9x3xbf16, #tpu.memory_space<vmem>>, vector<1x1x8x3xbf16>
    %370 = vector.shape_cast %369 : vector<1x1x8x3xbf16> to vector<8x3xbf16>
    %cst_403 = arith.constant dense<0.000000e+00> : vector<8x8xf32>
    %371 = tpu.matmul %370, %7, %cst_403 {dimension_numbers = #tpu.dot_dimension_numbers<[1], [0], [0], [1], [0, 0, 1, 1], [], []>} : vector<8x3xbf16>, vector<3x8xbf16>, vector<8x8xf32> -> vector<8x8xf32>
    %372 = arith.addf %368, %371 : vector<8x8xf32>
    %c3_404 = arith.constant 3 : index
    %c7_405 = arith.constant 7 : index
    %c0_406 = arith.constant 0 : index
    %c0_407 = arith.constant 0 : index
    %373 = vector.load %arg1[%c3_404, %c7_405, %c0_406, %c0_407] : memref<4x9x9x3xbf16, #tpu.memory_space<vmem>>, vector<1x1x8x3xbf16>
    %374 = vector.shape_cast %373 : vector<1x1x8x3xbf16> to vector<8x3xbf16>
    %cst_408 = arith.constant dense<0.000000e+00> : vector<8x8xf32>
    %375 = tpu.matmul %374, %9, %cst_408 {dimension_numbers = #tpu.dot_dimension_numbers<[1], [0], [0], [1], [0, 0, 1, 1], [], []>} : vector<8x3xbf16>, vector<3x8xbf16>, vector<8x8xf32> -> vector<8x8xf32>
    %376 = arith.addf %372, %375 : vector<8x8xf32>
    %c2_409 = arith.constant 2 : index
    %c7_410 = arith.constant 7 : index
    %c1_411 = arith.constant 1 : index
    %c0_412 = arith.constant 0 : index
    %377 = vector.load %arg1[%c2_409, %c7_410, %c1_411, %c0_412] : memref<4x9x9x3xbf16, #tpu.memory_space<vmem>>, vector<1x1x8x3xbf16>
    %378 = vector.shape_cast %377 : vector<1x1x8x3xbf16> to vector<8x3xbf16>
    %cst_413 = arith.constant dense<0.000000e+00> : vector<8x8xf32>
    %379 = tpu.matmul %378, %11, %cst_413 {dimension_numbers = #tpu.dot_dimension_numbers<[1], [0], [0], [1], [0, 0, 1, 1], [], []>} : vector<8x3xbf16>, vector<3x8xbf16>, vector<8x8xf32> -> vector<8x8xf32>
    %380 = arith.addf %376, %379 : vector<8x8xf32>
    %c0_414 = arith.constant 0 : index
    %c8_415 = arith.constant 8 : index
    %c0_416 = arith.constant 0 : index
    %c0_417 = arith.constant 0 : index
    %381 = vector.load %arg1[%c0_414, %c8_415, %c0_416, %c0_417] : memref<4x9x9x3xbf16, #tpu.memory_space<vmem>>, vector<1x1x8x3xbf16>
    %382 = vector.shape_cast %381 : vector<1x1x8x3xbf16> to vector<8x3xbf16>
    %cst_418 = arith.constant dense<0.000000e+00> : vector<8x8xf32>
    %383 = tpu.matmul %382, %13, %cst_418 {dimension_numbers = #tpu.dot_dimension_numbers<[1], [0], [0], [1], [0, 0, 1, 1], [], []>} : vector<8x3xbf16>, vector<3x8xbf16>, vector<8x8xf32> -> vector<8x8xf32>
    %384 = arith.addf %380, %383 : vector<8x8xf32>
    %c1_419 = arith.constant 1 : index
    %c8_420 = arith.constant 8 : index
    %c0_421 = arith.constant 0 : index
    %c0_422 = arith.constant 0 : index
    %385 = vector.load %arg1[%c1_419, %c8_420, %c0_421, %c0_422] : memref<4x9x9x3xbf16, #tpu.memory_space<vmem>>, vector<1x1x8x3xbf16>
    %386 = vector.shape_cast %385 : vector<1x1x8x3xbf16> to vector<8x3xbf16>
    %cst_423 = arith.constant dense<0.000000e+00> : vector<8x8xf32>
    %387 = tpu.matmul %386, %15, %cst_423 {dimension_numbers = #tpu.dot_dimension_numbers<[1], [0], [0], [1], [0, 0, 1, 1], [], []>} : vector<8x3xbf16>, vector<3x8xbf16>, vector<8x8xf32> -> vector<8x8xf32>
    %388 = arith.addf %384, %387 : vector<8x8xf32>
    %c0_424 = arith.constant 0 : index
    %c8_425 = arith.constant 8 : index
    %c1_426 = arith.constant 1 : index
    %c0_427 = arith.constant 0 : index
    %389 = vector.load %arg1[%c0_424, %c8_425, %c1_426, %c0_427] : memref<4x9x9x3xbf16, #tpu.memory_space<vmem>>, vector<1x1x8x3xbf16>
    %390 = vector.shape_cast %389 : vector<1x1x8x3xbf16> to vector<8x3xbf16>
    %cst_428 = arith.constant dense<0.000000e+00> : vector<8x8xf32>
    %391 = tpu.matmul %390, %17, %cst_428 {dimension_numbers = #tpu.dot_dimension_numbers<[1], [0], [0], [1], [0, 0, 1, 1], [], []>} : vector<8x3xbf16>, vector<3x8xbf16>, vector<8x8xf32> -> vector<8x8xf32>
    %392 = arith.addf %388, %391 : vector<8x8xf32>
    %393 = arith.truncf %392 : vector<8x8xf32> to vector<8x8xbf16>
    %c0_429 = arith.constant 0 : index
    %c7_430 = arith.constant 7 : index
    %c0_431 = arith.constant 0 : index
    %c0_432 = arith.constant 0 : index
    %394 = vector.load %arg3[%c0_429, %c7_430, %c0_431, %c0_432] : memref<1x8x8x8xbf16, #tpu.memory_space<vmem>>, vector<1x1x8x8xbf16>
    %395 = vector.shape_cast %394 : vector<1x1x8x8xbf16> to vector<8x8xbf16>
    %396 = vector.shape_cast %393 : vector<8x8xbf16> to vector<1x1x8x8xbf16>
    tpu.vector_store %arg3[%c0_429, %c7_430, %c0_431, %c0_432], %396 {strides = array<i32>} : memref<1x8x8x8xbf16, #tpu.memory_space<vmem>>, vector<1x1x8x8xbf16>,
    %cst_433 = arith.constant dense<0.000000e+00> : vector<8xf32>
    %397 = vector.multi_reduction <add>, %392, %cst_433 [0] : vector<8x8xf32> to vector<8xf32>
    %398 = vector.shape_cast %397 : vector<8xf32> to vector<1x8xf32>
    %399 = arith.addf %351, %398 : vector<1x8xf32>
    %400 = arith.mulf %392, %392 : vector<8x8xf32>
    %cst_434 = arith.constant dense<0.000000e+00> : vector<8xf32>
    %401 = vector.multi_reduction <add>, %400, %cst_434 [0] : vector<8x8xf32> to vector<8xf32>
    %402 = vector.shape_cast %401 : vector<8xf32> to vector<1x8xf32>
    %403 = arith.addf %355, %402 : vector<1x8xf32>
    %c0_435 = arith.constant 0 : index
    %c0_436 = arith.constant 0 : index
    %c0_437 = arith.constant 0 : index
    %404 = vector.load %arg4[%c0_435, %c0_436, %c0_437] : memref<1x1x8xf32, #tpu.memory_space<vmem>>, vector<1x1x8xf32>
    %405 = vector.shape_cast %404 : vector<1x1x8xf32> to vector<1x8xf32>
    %406 = vector.shape_cast %399 : vector<1x8xf32> to vector<1x1x8xf32>
    tpu.vector_store %arg4[%c0_435, %c0_436, %c0_437], %406 {strides = array<i32>} : memref<1x1x8xf32, #tpu.memory_space<vmem>>, vector<1x1x8xf32>,
    %c0_438 = arith.constant 0 : index
    %c0_439 = arith.constant 0 : index
    %c0_440 = arith.constant 0 : index
    %407 = vector.load %arg5[%c0_438, %c0_439, %c0_440] : memref<1x1x8xf32, #tpu.memory_space<vmem>>, vector<1x1x8xf32>
    %408 = vector.shape_cast %407 : vector<1x1x8xf32> to vector<1x8xf32>
    %409 = vector.shape_cast %403 : vector<1x8xf32> to vector<1x1x8xf32>
    tpu.vector_store %arg5[%c0_438, %c0_439, %c0_440], %409 {strides = array<i32>} : memref<1x1x8xf32, #tpu.memory_space<vmem>>, vector<1x1x8xf32>,
    return
  }
  func.func @transform_0(%arg0: i32) -> (i32, i32, i32, i32) {
    %c0_i32 = arith.constant 0 : i32
    %c0_i32_0 = arith.constant 0 : i32
    %c0_i32_1 = arith.constant 0 : i32
    %c0_i32_2 = arith.constant 0 : i32
    return %arg0, %c0_i32, %c0_i32_0, %c0_i32_1 : i32, i32, i32, i32
  }
  func.func @transform_1(%arg0: i32) -> (i32, i32, i32) {
    %c0_i32 = arith.constant 0 : i32
    %c0_i32_0 = arith.constant 0 : i32
    %c0_i32_1 = arith.constant 0 : i32
    %c0_i32_2 = arith.constant 0 : i32
    return %c0_i32, %c0_i32_0, %c0_i32_1 : i32, i32, i32
  }
  func.func @transform_2(%arg0: i32) -> (i32, i32, i32, i32) {
    %c0_i32 = arith.constant 0 : i32
    %c0_i32_0 = arith.constant 0 : i32
    %c0_i32_1 = arith.constant 0 : i32
    %c0_i32_2 = arith.constant 0 : i32
    return %arg0, %c0_i32, %c0_i32_0, %c0_i32_1 : i32, i32, i32, i32
  }
  func.func @transform_3(%arg0: i32) -> (i32, i32, i32) {
    %c0_i32 = arith.constant 0 : i32
    %c0_i32_0 = arith.constant 0 : i32
    %c0_i32_1 = arith.constant 0 : i32
    return %arg0, %c0_i32, %c0_i32_0 : i32, i32, i32
  }
  func.func @transform_4(%arg0: i32) -> (i32, i32, i32) {
    %c0_i32 = arith.constant 0 : i32
    %c0_i32_0 = arith.constant 0 : i32
    %c0_i32_1 = arith.constant 0 : i32
    return %arg0, %c0_i32, %c0_i32_0 : i32, i32, i32
  }
}

</mosaic_0001>

<bundles_post_ra>
// kernel: tpu_custom_call.1
= control target key start
LH: loop header
LB: loop body
LE: loop exit
PB: predicated region body
PF: predicated region fallthrough
CT: control target
= control target key end

     0   :  { %10 = vsyncpa [#allocation3], 0  ;;  %s3225_s0 = inlined_call_operand.vmem [shape: bf16[8,9,9,3], index: 0, kind: input, shape index: {}]   ;;  %s3226_s1 = inlined_call_operand.vmem [shape: bf16[9,3,8], index: 1, kind: input, shape index: {}]   ;;  %s3227_s2 = inlined_call_operand.hbm [shape: bf16[2,8,8,8], index: 2, kind: output, shape index: {0}]   ;;  %s3228_s3 = inlined_call_operand.hbm [shape: f32[2,1,8], index: 3, kind: output, shape index: {1}]   ;;  %s3229_s4 = inlined_call_operand.hbm [shape: f32[2,1,8], index: 4, kind: output, shape index: {2}]  }
   0x1   :  { %12 = vsyncpa [#allocation3 + $0x1], 0 }
   0x2   :  { %13 = vsyncpa [#allocation5], 0 }
   0x3   :  { %15 = vsyncpa [#allocation5 + $0x1], 0  ;;  %s2739_s15 = smov 0   ;;  %s2741_s16 = smov 0  }
   0x4   :  { %s2743_s17 = smov 0   ;;  %s2745_s18 = smov 0  }
   0x5 LB: > { %s2760_s19 = sadd.s32 4294967295, %s2709_s18   ;;  %s2221_s20 = sadd.s32 4294967294, %s2709_s18   ;;  %s2709_s18 = sphi %s2745_s18, %s3235_s18   ;;  %s2705_s17 = sphi %s2743_s17, %s3234_s17   ;;  %s2701_s16 = sphi %s2741_s16, %s3233_s16   ;;  %s2697_s15 = sphi %s2739_s15, %s3232_s15  }
   0x6   : > { %s2764_s21 = sadd.s32 1, %s2709_s18   ;;  %s75_s22 = sadd.s32 1, %s2705_s17 }
   0x7   : > { %s72_s23 = ssub.s32 %s2709_s18, %s2764_s21  ;;  %p85_p0 = scmp.ne.s32.totalorder %s2705_s17, %s2701_s16 }
   0x8   : > { %p73_p1 = scmp.eq.s32.totalorder %s72_s23, 0  ;;  %p86_p2 = scmp.eq.s32.totalorder %s2760_s19, 1 }
   0x9   : > { %p91_p3 = scmp.ne.s32.totalorder %s2701_s16, %s2697_s15  ;;  %p92_p4 = scmp.eq.s32.totalorder %s2221_s20, 1 }
   0xa   : > { %s2777_s24 = scalar_select %p73_p1, %s2705_s17, %s75_s22  }
   0xb   : > { %p2779_p5 = por %p86_p2, %p85_p0  ;;  %p2783_p6 = por %p92_p4, %p91_p3 }
   0xc   : > { %p2224_p7 = scmp.ge.s32.totalorder %s2709_s18, 1  ;;  %p175_p8 = scmp.lt.s32.totalorder %s2709_s18, 3 }
   0xe   : > { %p176_p9 = pnand %p2224_p7, %p175_p8 }
   0xf   : > { %s2226_s29 = sshll.u32 (!%p176_p9), %s2760_s19, 2  ;;  %s2533_s11 = sshll.u32 (!%p176_p9), %s2760_s19, 5 }
  0x10   : > { %179 = sbr.rel (%p176_p9) target bundleno = 479 (0x1df), region = 28  ;;  %p211_p10 = scmp.lt.s32.totalorder (!%p176_p9), %s2226_s29, 7 }
  0x11   : > { %s2076_s14 = scalar_lea.hbm (!%p176_p9), %s3227_s2, %s2533_s11  ;;  %s2607_s7 = scalar_lea.hbm (!%p176_p9), %s3227_s2, 64 }
  0x12   : > { %s2079_s23 = sshll.u32 (!%p176_p9), %s2076_s14, 4  ;;  %s2080_s23 = int_to_ptr.hbm [resolvable:$true] %s2079_s23 }
  0x13   : > { %s2601_s28 = sshra.s32 (!%p176_p9), %s2080_s23, 4  ;;  %s2602_s28 = int_to_ptr.hbm [resolvable:$true] %s2601_s28 }
  0x14   : > { %s2603_s30 = scalar_lea.hbm (!%p176_p9), %s2602_s28, 32  ;;  %p2608_p0 = scmp.lt.s32.totalorder (!%p176_p9), %s2602_s28, %s3227_s2 }
  0x15   : > { %v2228_v0 = vld [vmem:[%s3226_s1 + $0x2] sm:$0x3]  ;;  %vm242_vm0 = vcmask 1040384   ;;  %vm243_vm1 = vcmask 1041408   ;;  %v2711_v1 = vmov 65535   ;;  %s3237_s29 = smov (!%p211_p10, %s2226_s29), 7  ;;  %p2604_p11 = scmp.ne.s32.totalorder %s2602_s28, %s2603_s30 }
  0x16   : > { %v244_v2 = vsel %vm242_vm0, 4294967295, %v2711_v1  ;;  %v218_v3 = vld [vmem:[%s3226_s1] sm:$0x3]  ;;  %v2230_v4 = vld [vmem:[%s3226_s1 + $0x6] sm:$0x3]  ;;  %s2534_s5 = smul.u32 72, %s3237_s29  ;;  %p2609_p1 = scmp.lt.s32.totalorder %s2607_s7, %s2603_s30 }
  0x17   : > { %v245_v5 = vsel %vm243_vm1, %v244_v2, 0  ;;  %v2229_v6 = vld [vmem:[%s3226_s1 + $0x4] sm:$0x3]  ;;  %v2233_v7 = vld [vmem:[%s3226_s1 + $0xc] sm:$0x3]  ;;  %vm238_vm2 = vcmask 23552   ;;  %p2605_p12 = pnand %p2604_p11, %p2779_p5 }
  0x18   : > { %v2805_v8 = vand.u32 %v2228_v0, %v245_v5  ;;  %v2807_v9 = vand.u32 %v245_v5, %v218_v3  ;;  %v2809_v10 = vand.u32 %v2230_v4, %v245_v5  ;;  %v2811_v11 = vand.u32 %v2229_v6, %v245_v5  ;;  %v2231_v12 = vld [vmem:[%s3226_s1 + $0x8] sm:$0x3]  ;;  %v2234_v13 = vld [vmem:[%s3226_s1 + $0xe] sm:$0x3]  ;;  %v2232_v17 = vld [vmem:[%s3226_s1 + $0xa] sm:$0x3]  ;;  %s2842_s8 = scalar_lea.vmem %s3225_s0, %s2534_s5  ;;  %p2610_p2 = por %p2609_p1, %p2608_p0 }
  0x19   : > { %v2819_v14 = vand.u32 %v2233_v7, %v245_v5  ;;  %v2821_v15 = vand.u32 %v2231_v12, %v245_v5  ;;  %v2823_v16 = vand.u32 %v2234_v13, %v245_v5  ;;  %v2235_v18 = vld [vmem:[%s3226_s1 + $0x10] sm:$0x3]  ;;  %v2833_v19 = vand.u32 %v2232_v17, %v245_v5  ;;  %v2236_v21 = vld [vmem:[%s2842_s8 + $0x48] sm:$0xf]  ;;  %v235_v22 = vld [vmem:[%s2842_s8] sm:$0xf]  ;;  %p2606_p13 = pneg %p2605_p12 }
  0x1a   : > { %256 = vmatpush.bf16.msra.mxu0 %v2805_v8  ;;  %275 = vmatpush.bf16.msra.mxu1 %v2807_v9  ;;  %v2837_v20 = vand.u32 %v2235_v18, %v245_v5  ;;  %v2244_v23 = vld [vmem:[%s2842_s8 + $0x90] sm:$0xf]  ;;  %v2241_v24 = vld [vmem:[%s2842_s8] sm:$0xf]  ;;  %v2509_v25 = vld [vmem:[%s2842_s8] sm:$0x10] }
  0x1b   : > { %330 = vmatpush.bf16.msra.mxu3 %v2809_v10  ;;  %308 = vmatpush.bf16.msra.mxu2 %v2811_v11  ;;  %v2242_v26 = vor.u32 %v2509_v25, %v2241_v24  ;;  %v2252_v27 = vld [vmem:[%s2842_s8 + $0x90] sm:$0xf]  ;;  %v2510_v28 = vld [vmem:[%s2842_s8 + $0x90] sm:$0x10]  ;;  %v2246_v38 = vld [vmem:[%s2842_s8 + $0xd8] sm:$0xf]  ;;  %p2611_p3 = pnand %p2610_p2, %p2606_p13 }
  0x1c   : > { %v2253_v29 = vor.u32 %v2510_v28, %v2252_v27  ;;  %v2263_v39 = vld [vmem:[%s2842_s8 + $0x8] sm:$0xf]  ;;  %v2511_v40 = vld [vmem:[%s2842_s8 + $0x8] sm:$0x10]  ;;  %v2257_v41 = vld [vmem:[%s2842_s8 + $0x50] sm:$0xf] }
  0x1d   : > { %2237 = vmatmul.msk.bf16.vlgmr.msra.gmra.mxu0 %vm238_vm2, %v2236_v21  ;;  %2238 = vmatmul.msk.bf16.vlgmr.msra.gmra.mxu1 %vm238_vm2, %v235_v22  ;;  %v289_v30 = vshrl.u32 %v2242_v26, 16  ;;  %v291_v31 = vshll.u32 %v2242_v26, 16  ;;  %v2274_v42 = vld [vmem:[%s2842_s8 + $0x8] sm:$0xf]  ;;  %v2512_v43 = vld [vmem:[%s2842_s8 + $0x8] sm:$0x10]  ;;  %v2264_v44 = vor.u32 %v2511_v40, %v2263_v39 }
  0x1e   : > { %352 = vmatpush.bf16.msrb.mxu0 %v2821_v15  ;;  %386 = vmatpush.bf16.msrb.mxu1 %v2833_v19  ;;  %v369_v32 = vshll.u32 %v2253_v29, 16  ;;  %v367_v35 = vshrl.u32 %v2253_v29, 16  ;;  %v2275_v45 = vor.u32 %v2512_v43, %v2274_v42  ;;  %v2255_v48 = vld [vmem:[%s2842_s8 + $0x8] sm:$0xf]  ;;  %v2267_v54 = vld [vmem:[%s2842_s8 + $0x50] sm:$0xf] }
  0x1f   : > { %408 = vmatpush.bf16.msrb.mxu2 %v2819_v14  ;;  %430 = vmatpush.bf16.msrb.mxu3 %v2823_v16  ;;  %v293_v33 = vrot.slane %v291_v31, 1  ;;  %v447_v46 = vshll.u32 %v2264_v44, 16  ;;  %v445_v49 = vshrl.u32 %v2264_v44, 16  ;;  %v2266_v56 = vld [vmem:[%s2842_s8 + $0x8] sm:$0xf]  ;;  %s2984_s29 = sand.u32 1, %s2701_s16  }
  0x20   : > { %2245 = vmatmul.msk.bf16.vlgmr.msra.gmra.mxu3 %vm238_vm2, %v2244_v23  ;;  %v371_v36 = vrot.slane %v369_v32, 1  ;;  %v536_v47 = vshll.u32 %v2275_v45, 16  ;;  %v534_v51 = vshrl.u32 %v2275_v45, 16  ;;  %v2285_v57 = vld [vmem:[%s2842_s8 + $0x98] sm:$0xf]  ;;  %s2225_s9 = sshll.u32 %s2984_s29, 5 }
  0x21   : > { %v294_v34 = vor.u32 %v293_v33, %v289_v30  ;;  %v449_v50 = vrot.slane %v447_v46, 1  ;;  %v2513_v58 = vld [vmem:[%s2842_s8 + $0x98] sm:$0x10]  ;;  %v2277_v60 = vld [vmem:[%s2842_s8 + $0x98] sm:$0xf]  ;;  %vm472_vm3 = vcmask 60416  }
  0x22   : > { %464 = vmatpush.bf16.msra.mxu0 %v2837_v20  ;;  %504 = vmatpush.bf16.msra.mxu1 %v2805_v8  ;;  %v372_v37 = vor.u32 %v371_v36, %v367_v35  ;;  %v538_v52 = vrot.slane %v536_v47, 1  ;;  %v2286_v59 = vor.u32 %v2513_v58, %v2285_v57  ;;  %v2279_v61 = vld [vmem:[%s2842_s8 + $0xe0] sm:$0xf]  ;;  %v2296_v63 = vld [vmem:[%s2842_s8 + $0x10] sm:$0xf]  ;;  %s2999_s10 = scalar_lea.vmem [#allocation2], %s2225_s9 }
  0x23   : > { %550 = vmatpush.bf16.msra.mxu3 %v2811_v11  ;;  %2243 = vmatmul.msk.bf16.vlgmr.msra.gmra.mxu2 %vm238_vm2, %v294_v34  ;;  %v450_v53 = vor.u32 %v449_v50, %v445_v49  ;;  %v2514_v0 = vld [vmem:[%s2842_s8 + $0x10] sm:$0x10]  ;;  %v2288_v1 = vld [vmem:[%s2842_s8 + $0x10] sm:$0xf]  ;;  %v2290_v17 = vld [vmem:[%s2842_s8 + $0x58] sm:$0xf] }
  0x24   : > { %520 = vmatpush.bf16.msra.mxu2 %v2807_v9  ;;  %v539_v55 = vor.u32 %v538_v52, %v534_v51  ;;  %v605_v62 = vshll.u32 %v2286_v59, 16  ;;  %v2297_v2 = vor.u32 %v2514_v0, %v2296_v63  ;;  %v603_v3 = vshrl.u32 %v2286_v59, 16  ;;  %v2308_v18 = vld [vmem:[%s2842_s8 + $0x10] sm:$0xf]  ;;  %v2515_v21 = vld [vmem:[%s2842_s8 + $0x10] sm:$0x10] }
  0x25   : > { %v2300_v22 = vld [vmem:[%s2842_s8 + $0x10] sm:$0xf]  ;;  %v2319_v23 = vld [vmem:[%s2842_s8 + $0xa0] sm:$0xf]  ;;  %v2516_v24 = vld [vmem:[%s2842_s8 + $0xa0] sm:$0x10]  ;;  %v2309_v25 = vor.u32 %v2515_v21, %v2308_v18 }
  0x26   : > { %v607_v4 = vrot.slane %v605_v62, 1  ;;  %v674_v5 = vshll.u32 %v2297_v2, 16  ;;  %v672_v7 = vshrl.u32 %v2297_v2, 16  ;;  %v2320_v26 = vor.u32 %v2516_v24, %v2319_v23  ;;  %v2301_v29 = vld [vmem:[%s2842_s8 + $0x58] sm:$0xf]  ;;  %s2077_s22 = sshll.u32 %s2999_s10, 4  ;;  %s3135_s22 = int_to_ptr.vmem [resolvable:$true] %s2077_s22 }
  0x27   : > { %v759_v27 = vshll.u32 %v2309_v25, 16  ;;  %v757_v30 = vshrl.u32 %v2309_v25, 16  ;;  %v2311_v35 = vld [vmem:[%s2842_s8 + $0xa0] sm:$0xf]  ;;  %v2517_v39 = vld [vmem:[%s2842_s8 + $0x18] sm:$0x10] }
  0x28   : > { %v608_v6 = vor.u32 %v607_v4, %v603_v3  ;;  %v676_v12 = vrot.slane %v674_v5, 1  ;;  %v828_v28 = vshll.u32 %v2320_v26, 16  ;;  %v826_v32 = vshrl.u32 %v2320_v26, 16  ;;  %v2324_v42 = vld [vmem:[%s2842_s8 + $0x60] sm:$0xf]  ;;  %s2057_s27 = scalar_lea.sflag [#allocation3], %s2984_s29 }
  0x29   : > { %v761_v31 = vrot.slane %v759_v27, 1  ;;  %v2342_v44 = vld [vmem:[%s2842_s8 + $0x18] sm:$0xf]  ;;  %v2518_v45 = vld [vmem:[%s2842_s8 + $0x18] sm:$0x10]  ;;  %vm474_vm4 = vcmask 64512  }
  0x2a   : > { %v677_v13 = vor.u32 %v676_v12, %v672_v7  ;;  %v830_v33 = vrot.slane %v828_v28, 1  ;;  %v2335_v46 = vld [vmem:[%s2842_s8 + $0x60] sm:$0xf]  ;;  %v2343_v47 = vor.u32 %v2518_v45, %v2342_v44  ;;  %v2519_v57 = vld [vmem:[%s2842_s8 + $0xa8] sm:$0x10] }
  0x2b   : > { %v762_v34 = vor.u32 %v761_v31, %v757_v30  ;;  %v2347_v58 = vld [vmem:[%s2842_s8 + $0xf0] sm:$0xf]  ;;  %v2364_v59 = vld [vmem:[%s2842_s8 + $0x20] sm:$0xf]  ;;  %v2358_v23 = vld [vmem:[%s2842_s8 + $0x68] sm:$0xf] }
  0x2c   : > { %v831_v36 = vor.u32 %v830_v33, %v826_v32  ;;  %v982_v50 = vshll.u32 %v2343_v47, 16  ;;  %v980_v52 = vshrl.u32 %v2343_v47, 16  ;;  %v2376_v24 = vld [vmem:[%s2842_s8 + $0x20] sm:$0xf]  ;;  %v2521_v25 = vld [vmem:[%s2842_s8 + $0x20] sm:$0x10] }
  0x2d   : > { %2247 = vmatmul.msk.bf16.vlgmr.msrb.gmra.mxu0 %vm238_vm2, %v2246_v38  ;;  %2254 = vmatmul.msk.bf16.vlgmr.msrb.gmra.mxu1 %vm238_vm2, %v372_v37  ;;  %v2313_v37 = vld [vmem:[%s2842_s8 + $0xe8] sm:$0xf]  ;;  %v2330_v38 = vld [vmem:[%s2842_s8 + $0x18] sm:$0xf]  ;;  %v2377_v26 = vor.u32 %v2521_v25, %v2376_v24  ;;  %v2368_v30 = vld [vmem:[%s2842_s8 + $0x20] sm:$0xf] }
  0x2e   : > { %569 = vmatpush.bf16.msrb.mxu0 %v2809_v10  ;;  %588 = vmatpush.bf16.msrb.mxu1 %v2821_v15  ;;  %v2331_v40 = vor.u32 %v2517_v39, %v2330_v38 }
  0x30   : > { %2258 = vmatmul.msk.bf16.vlgmr.msrb.gmra.mxu3 %vm238_vm2, %v2257_v41  ;;  %v2322_v41 = vld [vmem:[%s2842_s8 + $0x18] sm:$0xf]  ;;  %v897_v43 = vshll.u32 %v2331_v40, 16 }
  0x31   : > { %638 = vmatpush.bf16.msrb.mxu3 %v2819_v14 }
  0x32   : > { %v899_v49 = vrot.slane %v897_v43, 1 }
  0x33   : > { %2256 = vmatmul.msk.bf16.vlgmr.msrb.gmra.mxu2 %vm238_vm2, %v2255_v48  ;;  %v895_v48 = vshrl.u32 %v2331_v40, 16  ;;  %v1203_v40 = vshrl.u32 %v2377_v26, 16 }
  0x34   : > { %619 = vmatpush.bf16.msrb.mxu2 %v2833_v19 }
  0x35   : > { %v900_v51 = vor.u32 %v899_v49, %v895_v48 }
  0x3d   : > { %2265 = vmatmul.msk.bf16.vlgmr.msra.gmra.mxu0 %vm238_vm2, %v450_v53  ;;  %2268 = vmatmul.msk.bf16.vlgmr.msra.gmra.mxu1 %vm238_vm2, %v2267_v54  ;;  %v984_v53 = vrot.slane %v982_v50, 1 }
  0x3e   : > { %657 = vmatpush.bf16.msra.mxu0 %v2823_v16  ;;  %688 = vmatpush.bf16.msra.mxu1 %v2837_v20 }
  0x3f   : > { %v985_v54 = vor.u32 %v984_v53, %v980_v52 }
  0x40   : > { %2276 = vmatmul.msk.bf16.vlgmr.msra.gmra.mxu3 %vm238_vm2, %v539_v55  ;;  %v2334_v55 = vld [vmem:[%s2842_s8 + $0x18] sm:$0xf] }
  0x41   : > { %743 = vmatpush.bf16.msra.mxu3 %v2807_v9 }
  0x43   : > { %2269 = vmatmul.msk.bf16.vlgmr.msra.gmra.mxu2 %vm238_vm2, %v2266_v56  ;;  %v2353_v56 = vld [vmem:[%s2842_s8 + $0xa8] sm:$0xf] }
  0x44   : > { %727 = vmatpush.bf16.msra.mxu2 %v2805_v8 }
  0x4d   : > { %2278 = vmatmul.msk.bf16.vlgmr.msrb.gmra.mxu0 %vm238_vm2, %v2277_v60  ;;  %2280 = vmatmul.msk.bf16.vlgmr.msrb.gmra.mxu1 %vm238_vm2, %v2279_v61  ;;  %v2520_v60 = vld [vmem:[%s2842_s8 + $0x20] sm:$0x10]  ;;  %v2354_v61 = vor.u32 %v2519_v57, %v2353_v56 }
  0x4e   : > { %773 = vmatpush.bf16.msrb.mxu0 %v2811_v11  ;;  %792 = vmatpush.bf16.msrb.mxu1 %v2809_v10  ;;  %v2365_v62 = vor.u32 %v2520_v60, %v2364_v59  ;;  %v2381_v59 = vld [vmem:[%s2842_s8 + $0xf8] sm:$0xf]  ;;  %v2398_v60 = vld [vmem:[%s2842_s8 + $0x28] sm:$0xf] }
  0x4f   : > { %v1051_v63 = vshll.u32 %v2354_v61, 16  ;;  %v1049_v2 = vshrl.u32 %v2354_v61, 16  ;;  %v2523_v61 = vld [vmem:[%s2842_s8 + $0x28] sm:$0x10] }
  0x50   : > { %2289 = vmatmul.msk.bf16.vlgmr.msrb.gmra.mxu3 %vm238_vm2, %v2288_v1  ;;  %v1120_v0 = vshll.u32 %v2365_v62, 16  ;;  %v2345_v1 = vld [vmem:[%s2842_s8 + $0xa8] sm:$0xf]  ;;  %v1118_v4 = vshrl.u32 %v2365_v62, 16  ;;  %v2392_v62 = vld [vmem:[%s2842_s8 + $0x70] sm:$0xf] }
  0x51   : > { %842 = vmatpush.bf16.msrb.mxu3 %v2833_v19  ;;  %v1053_v3 = vrot.slane %v1051_v63, 1  ;;  %v2410_v63 = vld [vmem:[%s2842_s8 + $0x28] sm:$0xf] }
  0x52   : > { %v1122_v5 = vrot.slane %v1120_v0, 1  ;;  %v2524_v0 = vld [vmem:[%s2842_s8 + $0x28] sm:$0x10] }
  0x53   : > { %2287 = vmatmul.msk.bf16.vlgmr.msrb.gmra.mxu2 %vm238_vm2, %v608_v6  ;;  %v1054_v6 = vor.u32 %v1053_v3, %v1049_v2  ;;  %v2399_v2 = vor.u32 %v2523_v61, %v2398_v60  ;;  %v2424_v60 = vld [vmem:[%s2842_s8 + $0x30] sm:$0xf] }
  0x54   : > { %811 = vmatpush.bf16.msrb.mxu2 %v2821_v15 }
  0x5d   : > { %2291 = vmatmul.msk.bf16.vlgmr.msra.gmra.mxu0 %vm238_vm2, %v2290_v17  ;;  %2298 = vmatmul.msk.bf16.vlgmr.msra.gmra.mxu1 %vm238_vm2, %v677_v13  ;;  %v2356_v13 = vld [vmem:[%s2842_s8 + $0x20] sm:$0xf]  ;;  %v1123_v17 = vor.u32 %v1122_v5, %v1118_v4  ;;  %v2411_v4 = vor.u32 %v2524_v0, %v2410_v63 }
  0x5e   : > { %861 = vmatpush.bf16.msra.mxu0 %v2819_v14  ;;  %880 = vmatpush.bf16.msra.mxu1 %v2823_v16 }
  0x5f   : > { %v1426_v24 = vshrl.u32 %v2411_v4, 16 }
  0x60   : > { %2303 = vmatmul.msk.bf16.vlgmr.msra.gmra.mxu3 %vm238_vm2, %v2300_v22 }
  0x61   : > { %950 = vmatpush.bf16.msra.mxu3 %v2805_v8 }
  0x63   : > { %2302 = vmatmul.msk.bf16.vlgmr.msra.gmra.mxu2 %vm238_vm2, %v2301_v29  ;;  %v2369_v29 = vld [vmem:[%s2842_s8 + $0x68] sm:$0xf] }
  0x64   : > { %911 = vmatpush.bf16.msra.mxu2 %v2837_v20 }
  0x6d   : > { %2310 = vmatmul.msk.bf16.vlgmr.msrb.gmra.mxu0 %vm238_vm2, %v762_v34  ;;  %2312 = vmatmul.msk.bf16.vlgmr.msrb.gmra.mxu1 %vm238_vm2, %v2311_v35  ;;  %v1205_v34 = vshll.u32 %v2377_v26, 16  ;;  %v2387_v35 = vld [vmem:[%s2842_s8 + $0xb0] sm:$0xf] }
  0x6e   : > { %966 = vmatpush.bf16.msrb.mxu0 %v2807_v9  ;;  %996 = vmatpush.bf16.msrb.mxu1 %v2811_v11 }
  0x70   : > { %2321 = vmatmul.msk.bf16.vlgmr.msrb.gmra.mxu3 %vm238_vm2, %v831_v36  ;;  %v2522_v36 = vld [vmem:[%s2842_s8 + $0xb0] sm:$0x10] }
  0x71   : > { %1034 = vmatpush.bf16.msrb.mxu3 %v2821_v15  ;;  %v2388_v39 = vor.u32 %v2522_v36, %v2387_v35 }
  0x73   : > { %2314 = vmatmul.msk.bf16.vlgmr.msrb.gmra.mxu2 %vm238_vm2, %v2313_v37  ;;  %v2379_v37 = vld [vmem:[%s2842_s8 + $0xb0] sm:$0xf]  ;;  %v1274_v45 = vshll.u32 %v2388_v39, 16  ;;  %v1272_v50 = vshrl.u32 %v2388_v39, 16  ;;  %v2402_v39 = vld [vmem:[%s2842_s8 + $0x28] sm:$0xf] }
  0x74   : > { %1015 = vmatpush.bf16.msrb.mxu2 %v2809_v10 }
  0x7d   : > { %2323 = vmatmul.msk.bf16.vlgmr.msra.gmra.mxu0 %vm238_vm2, %v2322_v41  ;;  %2325 = vmatmul.msk.bf16.vlgmr.msra.gmra.mxu1 %vm238_vm2, %v2324_v42  ;;  %v1207_v41 = vrot.slane %v1205_v34, 1 }
  0x7e   : > { %1065 = vmatpush.bf16.msra.mxu0 %v2833_v19  ;;  %1084 = vmatpush.bf16.msra.mxu1 %v2819_v14 }
  0x7f   : > { %v1208_v48 = vor.u32 %v1207_v41, %v1203_v40  ;;  %v2421_v40 = vld [vmem:[%s2842_s8 + $0xb8] sm:$0xf]  ;;  %v2525_v41 = vld [vmem:[%s2842_s8 + $0xb8] sm:$0x10] }
  0x80   : > { %2336 = vmatmul.msk.bf16.vlgmr.msra.gmra.mxu3 %vm238_vm2, %v2335_v46 }
  0x81   : > { %1134 = vmatpush.bf16.msra.mxu3 %v2837_v20 }
  0x83   : > { %2332 = vmatmul.msk.bf16.vlgmr.msra.gmra.mxu2 %vm238_vm2, %v900_v51  ;;  %v1276_v51 = vrot.slane %v1274_v45, 1  ;;  %v2422_v45 = vor.u32 %v2525_v41, %v2421_v40  ;;  %v2426_v40 = vld [vmem:[%s2842_s8 + $0x78] sm:$0xf] }
  0x84   : > { %1103 = vmatpush.bf16.msra.mxu2 %v2823_v16 }
  0x8d   : > { %2337 = vmatmul.msk.bf16.vlgmr.msrb.gmra.mxu0 %vm238_vm2, %v2334_v55  ;;  %2344 = vmatmul.msk.bf16.vlgmr.msrb.gmra.mxu1 %vm238_vm2, %v985_v54  ;;  %v1277_v55 = vor.u32 %v1276_v51, %v1272_v50  ;;  %v2413_v51 = vld [vmem:[%s2842_s8 + $0xb8] sm:$0xf] }
  0x8e   : > { %1173 = vmatpush.bf16.msrb.mxu0 %v2805_v8  ;;  %1189 = vmatpush.bf16.msrb.mxu1 %v2807_v9 }
  0x90   : > { %2348 = vmatmul.msk.bf16.vlgmr.msrb.gmra.mxu3 %vm238_vm2, %v2347_v58 }
  0x91   : > { %1238 = vmatpush.bf16.msrb.mxu3 %v2809_v10 }
  0x93   : > { %2346 = vmatmul.msk.bf16.vlgmr.msrb.gmra.mxu2 %vm238_vm2, %v2345_v1 }
  0x94   : > { %1219 = vmatpush.bf16.msrb.mxu2 %v2811_v11 }
  0x9a   : > { %v258_v7 = vpop.f32.mrf.mxu0  ;;  %v277_v12 = vpop.f32.mrf.mxu1 }
  0x9b   : > { %v278_v31 = vadd.f32 %v277_v12, %v258_v7  ;;  %v1343_v12 = vshll.u32 %v2399_v2, 16 }
  0x9d   : > { %2355 = vmatmul.msk.bf16.vlgmr.msra.gmra.mxu0 %vm238_vm2, %v1054_v6  ;;  %2357 = vmatmul.msk.bf16.vlgmr.msra.gmra.mxu1 %vm238_vm2, %v2356_v13 }
  0x9e   : > { %1257 = vmatpush.bf16.msra.mxu0 %v2821_v15  ;;  %1288 = vmatpush.bf16.msra.mxu1 %v2833_v19 }
  0xa0   : > { %2366 = vmatmul.msk.bf16.vlgmr.msra.gmra.mxu3 %vm238_vm2, %v1123_v17 }
  0xa1   : > { %1326 = vmatpush.bf16.msra.mxu3 %v2823_v16 }
  0xa2   : > { %v260_v21 = vpop.f32.mrf.mxu0  ;;  %v279_v22 = vpop.f32.mrf.mxu1 }
  0xa3   : > { %v332_v18 = vpop.f32.mrf.mxu3  ;;  %2359 = vmatmul.msk.bf16.vlgmr.msra.gmra.mxu2 %vm238_vm2, %v2358_v23  ;;  %v2390_v21 = vld [vmem:[%s2842_s8 + $0x28] sm:$0xf]  ;;  %v1341_v22 = vshrl.u32 %v2399_v2, 16  ;;  %v1345_v23 = vrot.slane %v1343_v12, 1 }
  0xa4   : > { %1307 = vmatpush.bf16.msra.mxu2 %v2819_v14 }
  0xa6   : > { %v310_v27 = vpop.f32.mrf.mxu2 }
  0xa7   : > { %v314_v38 = vadd.f32 %v310_v27, %v278_v31  ;;  %v2403_v31 = vld [vmem:[%s2842_s8 + $0x70] sm:$0xf] }
  0xa9   : > { %v336_v42 = vadd.f32 %v332_v18, %v314_v38  ;;  %v1428_v18 = vshll.u32 %v2411_v4, 16 }
  0xaa   : > { %v354_v32 = vpop.f32.mrf.mxu0  ;;  %v388_v33 = vpop.f32.mrf.mxu1 }
  0xab   : > { %v334_v28 = vpop.f32.mrf.mxu3  ;;  %v358_v49 = vadd.f32 %v354_v32, %v336_v42  ;;  %v1430_v25 = vrot.slane %v1428_v18, 1 }
  0xac   : > { %v1346_v28 = vor.u32 %v1345_v23, %v1341_v22 }
  0xad   : > { %2370 = vmatmul.msk.bf16.vlgmr.msrb.gmra.mxu0 %vm238_vm2, %v2369_v29  ;;  %2371 = vmatmul.msk.bf16.vlgmr.msrb.gmra.mxu1 %vm238_vm2, %v2368_v30  ;;  %v392_v52 = vadd.f32 %v388_v33, %v358_v49  ;;  %v1431_v32 = vor.u32 %v1430_v25, %v1426_v24 }
  0xae   : > { %1357 = vmatpush.bf16.msrb.mxu0 %v2837_v20  ;;  %1396 = vmatpush.bf16.msrb.mxu1 %v2805_v8  ;;  %v312_v43 = vpop.f32.mrf.mxu2 }
  0xb0   : > { %2380 = vmatmul.msk.bf16.vlgmr.msrb.gmra.mxu3 %vm238_vm2, %v2379_v37 }
  0xb1   : > { %1442 = vmatpush.bf16.msrb.mxu3 %v2811_v11 }
  0xb2   : > { %v356_v46 = vpop.f32.mrf.mxu0  ;;  %v390_v47 = vpop.f32.mrf.mxu1 }
  0xb3   : > { %v432_v44 = vpop.f32.mrf.mxu3  ;;  %2378 = vmatmul.msk.bf16.vlgmr.msrb.gmra.mxu2 %vm238_vm2, %v1208_v48 }
  0xb4   : > { %1412 = vmatpush.bf16.msrb.mxu2 %v2807_v9 }
  0xb6   : > { %v410_v53 = vpop.f32.mrf.mxu2 }
  0xb7   : > { %v414_v56 = vadd.f32 %v410_v53, %v392_v52  ;;  %v2415_v52 = vld [vmem:[%s2842_s8 + $0x100] sm:$0xf] }
  0xb9   : > { %v436_v1 = vadd.f32 %v432_v44, %v414_v56  ;;  %v1497_v56 = vshll.u32 %v2422_v45, 16 }
  0xba   : > { %v466_v57 = vpop.f32.mrf.mxu0  ;;  %v506_v58 = vpop.f32.mrf.mxu1 }
  0xbb   : > { %v434_v54 = vpop.f32.mrf.mxu3  ;;  %v470_v3 = vadd.f32 %v466_v57, %v436_v1  ;;  %v2432_v57 = vld [vmem:[%s2842_s8 + $0x30] sm:$0xf]  ;;  %v1495_v1 = vshrl.u32 %v2422_v45, 16  ;;  %v1499_v2 = vrot.slane %v1497_v56, 1 }
  0xbc   : > { %v2444_v45 = vld [vmem:[%s2842_s8 + $0x30] sm:$0xf] }
  0xbd   : > { %2382 = vmatmul.msk.bf16.vlgmr.msra.gmra.mxu0 %vm238_vm2, %v2381_v59  ;;  %2389 = vmatmul.msk.bf16.vlgmr.msra.gmra.mxu1 %vm238_vm2, %v1277_v55  ;;  %v471_v5 = vpack.c.bf16 %v470_v3, %v470_v3  ;;  %v483_v42 = vmul.f32 %v470_v3, %v470_v3  ;;  %v475_v44 = vsel %vm474_vm4, %v470_v3, 0.0  ;;  %v1500_v23 = vor.u32 %v1499_v2, %v1495_v1 }
  0xbe   : > { %1461 = vmatpush.bf16.msra.mxu0 %v2809_v10  ;;  %1480 = vmatpush.bf16.msra.mxu1 %v2821_v15  ;;  %v412_v6 = vpop.f32.mrf.mxu2  ;;  %v476_v46 = vrot.slane %v475_v44, 4 }
  0xbf   : > { %473 = vst.msk [vmem:[%s2999_s10] sm:$0xf] %vm472_vm3, %v471_v5  ;;  %v484_v47 = vsel %vm474_vm4, %v483_v42, 0.0 }
  0xc0   : > { %2393 = vmatmul.msk.bf16.vlgmr.msra.gmra.mxu3 %vm238_vm2, %v2392_v62  ;;  %v485_v59 = vrot.slane %v484_v47, 4  ;;  %v477_v61 = vadd.f32 %v476_v46, %v475_v44  ;;  %v2436_v44 = vld [vmem:[%s2842_s8 + $0x30] sm:$0xf]  ;;  %v2527_v46 = vld [vmem:[%s2842_s8 + $0x30] sm:$0x10] }
  0xc1   : > { %1530 = vmatpush.bf16.msra.mxu3 %v2819_v14 }
  0xc2   : > { %v468_v13 = vpop.f32.mrf.mxu0  ;;  %v508_v17 = vpop.f32.mrf.mxu1  ;;  %v486_v3 = vadd.f32 %v485_v59, %v484_v47  ;;  %v478_v4 = vrot.slane %v477_v61, 2 }
  0xc3   : > { %v552_v7 = vpop.f32.mrf.mxu3  ;;  %2391 = vmatmul.msk.bf16.vlgmr.msra.gmra.mxu2 %vm238_vm2, %v2390_v21 }
  0xc4   : > { %1511 = vmatpush.bf16.msra.mxu2 %v2833_v19  ;;  %v487_v24 = vrot.slane %v486_v3, 2 }
  0xc6   : > { %v522_v26 = vpop.f32.mrf.mxu2 }
  0xc7   : > { %v523_v33 = vadd.f32 %v522_v26, %v506_v58  ;;  %v2526_v58 = vld [vmem:[%s2842_s8 + $0x30] sm:$0x10]  ;;  %v479_v26 = vadd.f32 %v478_v4, %v477_v61  ;;  %v2437_v4 = vld [vmem:[%s2842_s8 + $0x78] sm:$0xf] }
  0xc8   : > { %v2433_v63 = vor.u32 %v2526_v58, %v2432_v57 }
  0xc9   : > { %v556_v34 = vadd.f32 %v552_v7, %v523_v33 }
  0xca   : > { %v571_v29 = vpop.f32.mrf.mxu0  ;;  %v590_v30 = vpop.f32.mrf.mxu1  ;;  %v1566_v12 = vshll.u32 %v2433_v63, 16 }
  0xcb   : > { %v554_v27 = vpop.f32.mrf.mxu3  ;;  %v575_v43 = vadd.f32 %v571_v29, %v556_v34 }
  0xcd   : > { %2400 = vmatmul.msk.bf16.vlgmr.msrb.gmra.mxu0 %vm238_vm2, %v1346_v28  ;;  %2404 = vmatmul.msk.bf16.vlgmr.msrb.gmra.mxu1 %vm238_vm2, %v2403_v31  ;;  %v594_v48 = vadd.f32 %v590_v30, %v575_v43  ;;  %v1564_v30 = vshrl.u32 %v2433_v63, 16  ;;  %v1568_v31 = vrot.slane %v1566_v12, 1 }
  0xce   : > { %1549 = vmatpush.bf16.msrb.mxu0 %v2823_v16  ;;  %1580 = vmatpush.bf16.msrb.mxu1 %v2837_v20  ;;  %v524_v35 = vpop.f32.mrf.mxu2 }
  0xcf   : > { %v480_v35 = vrot.slane %v479_v26, 1  ;;  %v1569_v41 = vor.u32 %v1568_v31, %v1564_v30 }
  0xd0   : > { %2412 = vmatmul.msk.bf16.vlgmr.msrb.gmra.mxu3 %vm238_vm2, %v1431_v32  ;;  %v488_v32 = vadd.f32 %v487_v24, %v486_v3  ;;  %v2447_v24 = vld [vmem:[%s2842_s8 + $0xc0] sm:$0xf] }
  0xd1   : > { %1635 = vmatpush.bf16.msrb.mxu3 %v2807_v9 }
  0xd2   : > { %v573_v37 = vpop.f32.mrf.mxu0  ;;  %v592_v38 = vpop.f32.mrf.mxu1  ;;  %v489_v47 = vrot.slane %v488_v32, 1 }
  0xd3   : > { %v640_v36 = vpop.f32.mrf.mxu3  ;;  %2405 = vmatmul.msk.bf16.vlgmr.msrb.gmra.mxu2 %vm238_vm2, %v2402_v39 }
  0xd4   : > { %1619 = vmatpush.bf16.msrb.mxu2 %v2805_v8  ;;  %v490_v57 = vadd.f32 %v489_v47, %v488_v32  ;;  %v2449_v32 = vld [vmem:[%s2842_s8 + $0x108] sm:$0xf] }
  0xd6   : > { %v621_v49 = vpop.f32.mrf.mxu2 }
  0xd7   : > { %v625_v53 = vadd.f32 %v621_v49, %v594_v48 }
  0xd9   : > { %v644_v62 = vadd.f32 %v640_v36, %v625_v53 }
  0xda   : > { %v659_v54 = vpop.f32.mrf.mxu0  ;;  %v690_v55 = vpop.f32.mrf.mxu1 }
  0xdb   : > { %v642_v50 = vpop.f32.mrf.mxu3  ;;  %v663_v0 = vadd.f32 %v659_v54, %v644_v62 }
  0xdc   : > { %v2455_v50 = vld [vmem:[%s2842_s8 + $0xc0] sm:$0xf] }
  0xdd   : > { %2414 = vmatmul.msk.bf16.vlgmr.msra.gmra.mxu0 %vm238_vm2, %v2413_v51  ;;  %2416 = vmatmul.msk.bf16.vlgmr.msra.gmra.mxu1 %vm238_vm2, %v2415_v52  ;;  %v694_v5 = vadd.f32 %v690_v55, %v663_v0  ;;  %v2528_v51 = vld [vmem:[%s2842_s8 + $0xc0] sm:$0x10]  ;;  %v481_v52 = vadd.f32 %v480_v35, %v479_v26  ;;  %v2445_v55 = vor.u32 %v2527_v46, %v2444_v45  ;;  %v2471_v45 = vld [vmem:[%s2842_s8 + $0x80] sm:$0xf] }
  0xde   : > { %1665 = vmatpush.bf16.msra.mxu0 %v2811_v11  ;;  %1684 = vmatpush.bf16.msra.mxu1 %v2809_v10  ;;  %v623_v6 = vpop.f32.mrf.mxu2  ;;  %v2456_v56 = vor.u32 %v2528_v51, %v2455_v50 }
  0xdf   : > { %v695_v13 = vpack.c.bf16 %v694_v5, %v694_v5  ;;  %v698_v17 = vsel %vm474_vm4, %v694_v5, 0.0  ;;  %v706_v18 = vmul.f32 %v694_v5, %v694_v5  ;;  %v1651_v63 = vshll.u32 %v2445_v55, 16 }
  0xe0   : > { %2425 = vmatmul.msk.bf16.vlgmr.msra.gmra.mxu3 %vm238_vm2, %v2424_v60  ;;  %v699_v25 = vrot.slane %v698_v17, 4  ;;  %v1720_v3 = vshll.u32 %v2456_v56, 16  ;;  %v1649_v5 = vshrl.u32 %v2445_v55, 16 }
  0xe1   : > { %1734 = vmatpush.bf16.msra.mxu3 %v2833_v19  ;;  %v707_v27 = vsel %vm474_vm4, %v706_v18, 0.0  ;;  %2299 = vst.msk [vmem:[%s2999_s10 + $0x4] sm:$0xf] %vm472_vm3, %v695_v13  ;;  %v1653_v6 = vrot.slane %v1651_v63, 1  ;;  %v1718_v13 = vshrl.u32 %v2456_v56, 16 }
  0xe2   : > { %v661_v21 = vpop.f32.mrf.mxu0  ;;  %v692_v22 = vpop.f32.mrf.mxu1  ;;  %v700_v28 = vadd.f32 %v699_v25, %v698_v17  ;;  %v708_v29 = vrot.slane %v707_v27, 4 }
  0xe3   : > { %v745_v7 = vpop.f32.mrf.mxu3  ;;  %2423 = vmatmul.msk.bf16.vlgmr.msra.gmra.mxu2 %vm238_vm2, %v1500_v23  ;;  %v1654_v21 = vor.u32 %v1653_v6, %v1649_v5 }
  0xe4   : > { %v701_v33 = vrot.slane %v700_v28, 2  ;;  %v709_v34 = vadd.f32 %v708_v29, %v707_v27  ;;  %1703 = vmatpush.bf16.msra.mxu2 %v2821_v15 }
  0xe6   : > { %v702_v36 = vadd.f32 %v701_v33, %v700_v28  ;;  %v710_v37 = vrot.slane %v709_v34, 2  ;;  %v729_v38 = vpop.f32.mrf.mxu2  ;;  %v2466_v33 = vld [vmem:[%s2842_s8 + $0x38] sm:$0xf] }
  0xe7   : > { %v746_v0 = vadd.f32 %v745_v7, %v729_v38  ;;  %v2460_v38 = vld [vmem:[%s2842_s8 + $0x80] sm:$0xf] }
  0xe8   : > { %v703_v48 = vrot.slane %v702_v36, 1  ;;  %v711_v49 = vadd.f32 %v710_v37, %v709_v34  ;;  %v2529_v34 = vld [vmem:[%s2842_s8 + $0x38] sm:$0x10]  ;;  %v2458_v37 = vld [vmem:[%s2842_s8 + $0x38] sm:$0xf] }
  0xea   : > { %v775_v42 = vpop.f32.mrf.mxu0  ;;  %v794_v43 = vpop.f32.mrf.mxu1  ;;  %v704_v53 = vadd.f32 %v703_v48, %v702_v36  ;;  %v712_v54 = vrot.slane %v711_v49, 1 }
  0xeb   : > { %v747_v39 = vpop.f32.mrf.mxu3  ;;  %v779_v12 = vadd.f32 %v775_v42, %v746_v0 }
  0xec   : > { %v3047_v58 = vadd.f32 %v704_v53, %v481_v52  ;;  %v713_v59 = vadd.f32 %v712_v54, %v711_v49 }
  0xed   : > { %2427 = vmatmul.msk.bf16.vlgmr.msrb.gmra.mxu0 %vm238_vm2, %v2426_v40  ;;  %2434 = vmatmul.msk.bf16.vlgmr.msrb.gmra.mxu1 %vm238_vm2, %v1569_v41  ;;  %v798_v22 = vadd.f32 %v794_v43, %v779_v12  ;;  %v2478_v43 = vld [vmem:[%s2842_s8 + $0x38] sm:$0xf] }
  0xee   : > { %1753 = vmatpush.bf16.msrb.mxu0 %v2819_v14  ;;  %1772 = vmatpush.bf16.msrb.mxu1 %v2823_v16  ;;  %v3051_v60 = vadd.f32 %v713_v59, %v490_v57  ;;  %v731_v61 = vpop.f32.mrf.mxu2 }
  0xf0   : > { %2439 = vmatmul.msk.bf16.vlgmr.msrb.gmra.mxu3 %vm238_vm2, %v2436_v44  ;;  %v2530_v44 = vld [vmem:[%s2842_s8 + $0x38] sm:$0x10] }
  0xf1   : > { %1842 = vmatpush.bf16.msrb.mxu3 %v2805_v8  ;;  %v1722_v8 = vrot.slane %v1720_v3, 1 }
  0xf2   : > { %v777_v1 = vpop.f32.mrf.mxu0  ;;  %v796_v2 = vpop.f32.mrf.mxu1 }
  0xf3   : > { %v844_v62 = vpop.f32.mrf.mxu3  ;;  %2438 = vmatmul.msk.bf16.vlgmr.msrb.gmra.mxu2 %vm238_vm2, %v2437_v4  ;;  %v1723_v25 = vor.u32 %v1722_v8, %v1718_v13 }
  0xf4   : > { %1803 = vmatpush.bf16.msrb.mxu2 %v2837_v20 }
  0xf6   : > { %v813_v17 = vpop.f32.mrf.mxu2 }
  0xf7   : > { %v817_v26 = vadd.f32 %v813_v17, %v798_v22 }
  0xf9   : > { %v848_v27 = vadd.f32 %v844_v62, %v817_v26 }
  0xfa   : > { %v863_v23 = vpop.f32.mrf.mxu0  ;;  %v882_v7 = vpop.f32.mrf.mxu1 }
  0xfb   : > { %v846_v18 = vpop.f32.mrf.mxu3  ;;  %v867_v35 = vadd.f32 %v863_v23, %v848_v27  ;;  %v2483_v27 = vld [vmem:[%s2842_s8 + $0x110] sm:$0xf] }
  0xfd   : > { %2446 = vmatmul.msk.bf16.vlgmr.msra.gmra.mxu0 %vm238_vm2, %v1654_v21  ;;  %2448 = vmatmul.msk.bf16.vlgmr.msra.gmra.mxu1 %vm238_vm2, %v2447_v24  ;;  %v2489_v24 = vld [vmem:[%s2842_s8 + $0xc8] sm:$0xf] }
  0xfe   : > { %1858 = vmatpush.bf16.msra.mxu0 %v2807_v9  ;;  %1888 = vmatpush.bf16.msra.mxu1 %v2811_v11  ;;  %v815_v28 = vpop.f32.mrf.mxu2  ;;  %v2467_v9 = vor.u32 %v2529_v34, %v2466_v33  ;;  %v886_v11 = vadd.f32 %v882_v7, %v867_v35  ;;  %v2470_v7 = vld [vmem:[%s2842_s8 + $0x38] sm:$0xf] }
  0xff   : > { %v2500_v28 = vld [vmem:[%s2842_s8 + $0x40] sm:$0xf] }
 0x100   : > { %2457 = vmatmul.msk.bf16.vlgmr.msra.gmra.mxu3 %vm238_vm2, %v1723_v25  ;;  %v1789_v42 = vshll.u32 %v2467_v9, 16  ;;  %v1787_v51 = vshrl.u32 %v2467_v9, 16  ;;  %v2531_v25 = vld [vmem:[%s2842_s8 + $0xc8] sm:$0x10] }
 0x101   : > { %1926 = vmatpush.bf16.msra.mxu3 %v2821_v15 }
 0x102   : > { %v865_v30 = vpop.f32.mrf.mxu0  ;;  %v884_v31 = vpop.f32.mrf.mxu1  ;;  %v1791_v52 = vrot.slane %v1789_v42, 1 }
 0x103   : > { %v952_v29 = vpop.f32.mrf.mxu3  ;;  %2450 = vmatmul.msk.bf16.vlgmr.msra.gmra.mxu2 %vm238_vm2, %v2449_v32 }
 0x104   : > { %1907 = vmatpush.bf16.msra.mxu2 %v2809_v10  ;;  %v2479_v10 = vor.u32 %v2530_v44, %v2478_v43  ;;  %v1792_v0 = vor.u32 %v1791_v52, %v1787_v51 }
 0x106   : > { %v913_v15 = vpop.f32.mrf.mxu2  ;;  %v1874_v61 = vshll.u32 %v2479_v10, 16  ;;  %v1872_v4 = vshrl.u32 %v2479_v10, 16 }
 0x107   : > { %v917_v39 = vadd.f32 %v913_v15, %v886_v11  ;;  %v2481_v11 = vld [vmem:[%s2842_s8 + $0xc8] sm:$0xf] }
 0x108   : > { %v1876_v5 = vrot.slane %v1874_v61, 1 }
 0x109   : > { %v918_v46 = vpack.c.bf16 %v917_v39, %v917_v39  ;;  %v921_v47 = vsel %vm474_vm4, %v917_v39, 0.0  ;;  %v929_v48 = vmul.f32 %v917_v39, %v917_v39 }
 0x10a   : > { %v968_v40 = vpop.f32.mrf.mxu0  ;;  %v998_v41 = vpop.f32.mrf.mxu1  ;;  %v922_v49 = vrot.slane %v921_v47, 4  ;;  %v1877_v18 = vor.u32 %v1876_v5, %v1872_v4 }
 0x10b   : > { %v954_v36 = vpop.f32.mrf.mxu3  ;;  %v930_v50 = vsel %vm474_vm4, %v929_v48, 0.0  ;;  %2333 = vst.msk [vmem:[%s2999_s10 + $0x8] sm:$0xf] %vm472_vm3, %v918_v46  ;;  %v2492_v48 = vld [vmem:[%s2842_s8 + $0x40] sm:$0xf] }
 0x10c   : > { %v923_v53 = vadd.f32 %v922_v49, %v921_v47  ;;  %v931_v54 = vrot.slane %v930_v50, 4 }
 0x10d   : > { %2459 = vmatmul.msk.bf16.vlgmr.msrb.gmra.mxu0 %vm238_vm2, %v2458_v37  ;;  %2461 = vmatmul.msk.bf16.vlgmr.msrb.gmra.mxu1 %vm238_vm2, %v2460_v38 }
 0x10e   : > { %1957 = vmatpush.bf16.msrb.mxu0 %v2833_v19  ;;  %1976 = vmatpush.bf16.msrb.mxu1 %v2819_v14  ;;  %v924_v55 = vrot.slane %v923_v53, 2  ;;  %v932_v56 = vadd.f32 %v931_v54, %v930_v50  ;;  %v915_v57 = vpop.f32.mrf.mxu2 }
 0x110   : > { %2472 = vmatmul.msk.bf16.vlgmr.msrb.gmra.mxu3 %vm238_vm2, %v2471_v45  ;;  %v925_v1 = vadd.f32 %v924_v55, %v923_v53  ;;  %v933_v2 = vrot.slane %v932_v56, 2 }
 0x111   : > { %2026 = vmatpush.bf16.msrb.mxu3 %v2837_v20  ;;  %v969_v20 = vadd.f32 %v968_v40, %v952_v29 }
 0x112   : > { %v970_v62 = vpop.f32.mrf.mxu0  ;;  %v1000_v63 = vpop.f32.mrf.mxu1  ;;  %v926_v3 = vrot.slane %v925_v1, 1  ;;  %v934_v19 = vadd.f32 %v933_v2, %v932_v56 }
 0x113   : > { %v1036_v59 = vpop.f32.mrf.mxu3  ;;  %2468 = vmatmul.msk.bf16.vlgmr.msrb.gmra.mxu2 %vm238_vm2, %v1792_v0  ;;  %v1002_v21 = vadd.f32 %v998_v41, %v969_v20  ;;  %v2494_v0 = vld [vmem:[%s2842_s8 + $0x88] sm:$0xf] }
 0x114   : > { %v927_v14 = vadd.f32 %v926_v3, %v925_v1  ;;  %v935_v6 = vrot.slane %v934_v19, 1  ;;  %1995 = vmatpush.bf16.msrb.mxu2 %v2823_v16  ;;  %v2532_v16 = vld [vmem:[%s2842_s8 + $0x40] sm:$0x10] }
 0x115   : > { %v2501_v30 = vor.u32 %v2532_v16, %v2500_v28 }
 0x116   : > { %v3086_v12 = vadd.f32 %v927_v14, %v3047_v58  ;;  %v936_v13 = vadd.f32 %v935_v6, %v934_v19  ;;  %v1017_v8 = vpop.f32.mrf.mxu2  ;;  %v2490_v58 = vor.u32 %v2531_v25, %v2489_v24 }
 0x117   : > { %v1021_v29 = vadd.f32 %v1017_v8, %v1002_v21  ;;  %v2012_v9 = vshll.u32 %v2501_v30, 16  ;;  %v2010_v38 = vshrl.u32 %v2501_v30, 16 }
 0x118   : > { %v3092_v26 = vadd.f32 %v936_v13, %v3051_v60  ;;  %v1943_v34 = vshll.u32 %v2490_v58, 16  ;;  %v1941_v36 = vshrl.u32 %v2490_v58, 16 }
 0x119   : > { %v1040_v31 = vadd.f32 %v1036_v59, %v1021_v29  ;;  %v2014_v39 = vrot.slane %v2012_v9, 1 }
 0x11a   : > { %v1067_v22 = vpop.f32.mrf.mxu0  ;;  %v1086_v23 = vpop.f32.mrf.mxu1  ;;  %v1945_v37 = vrot.slane %v1943_v34, 1 }
 0x11b   : > { %v1038_v17 = vpop.f32.mrf.mxu3  ;;  %v1071_v15 = vadd.f32 %v1067_v22, %v1040_v31  ;;  %v2015_v47 = vor.u32 %v2014_v39, %v2010_v38 }
 0x11c   : > { %v1946_v43 = vor.u32 %v1945_v37, %v1941_v36 }
 0x11d   : > { %2473 = vmatmul.msk.bf16.vlgmr.msra.gmra.mxu0 %vm238_vm2, %v2470_v7  ;;  %2480 = vmatmul.msk.bf16.vlgmr.msra.gmra.mxu1 %vm238_vm2, %v1877_v18  ;;  %v1090_v40 = vadd.f32 %v1086_v23, %v1071_v15 }
 0x11e   : > { %v1019_v32 = vpop.f32.mrf.mxu2 }
 0x120   : > { %2484 = vmatmul.msk.bf16.vlgmr.msra.gmra.mxu3 %vm238_vm2, %v2483_v27 }
 0x122   : > { %v1069_v35 = vpop.f32.mrf.mxu0  ;;  %v1088_v60 = vpop.f32.mrf.mxu1 }
 0x123   : > { %v1136_v33 = vpop.f32.mrf.mxu3  ;;  %2482 = vmatmul.msk.bf16.vlgmr.msra.gmra.mxu2 %vm238_vm2, %v2481_v11 }
 0x126   : > { %v1105_v41 = vpop.f32.mrf.mxu2 }
 0x127   : > { %v1109_v44 = vadd.f32 %v1105_v41, %v1090_v40 }
 0x129   : > { %v1140_v49 = vadd.f32 %v1136_v33, %v1109_v44 }
 0x12a   : > { %v1175_v45 = vpop.f32.mrf.mxu0  ;;  %v1191_v46 = vpop.f32.mrf.mxu1 }
 0x12b   : > { %v1138_v42 = vpop.f32.mrf.mxu3  ;;  %v1141_v10 = vpack.c.bf16 %v1140_v49, %v1140_v49  ;;  %v1144_v50 = vsel %vm474_vm4, %v1140_v49, 0.0  ;;  %v1152_v51 = vmul.f32 %v1140_v49, %v1140_v49  ;;  %v1192_v6 = vadd.f32 %v1191_v46, %v1175_v45 }
 0x12c   : > { %v1145_v52 = vrot.slane %v1144_v50, 4 }
 0x12d   : > { %2491 = vmatmul.msk.bf16.vlgmr.msrb.gmra.mxu0 %vm238_vm2, %v1946_v43  ;;  %2493 = vmatmul.msk.bf16.vlgmr.msrb.gmra.mxu1 %vm238_vm2, %v2492_v48  ;;  %v1153_v53 = vsel %vm474_vm4, %v1152_v51, 0.0  ;;  %2367 = vst.msk [vmem:[%s2999_s10 + $0xc] sm:$0xf] %vm472_vm3, %v1141_v10 }
 0x12e   : > { %v1146_v54 = vadd.f32 %v1145_v52, %v1144_v50  ;;  %v1154_v55 = vrot.slane %v1153_v53, 4  ;;  %v1107_v56 = vpop.f32.mrf.mxu2 }
 0x130   : > { %2502 = vmatmul.msk.bf16.vlgmr.msrb.gmra.mxu3 %vm238_vm2, %v2015_v47  ;;  %v1147_v62 = vrot.slane %v1146_v54, 2  ;;  %v1155_v63 = vadd.f32 %v1154_v55, %v1153_v53 }
 0x132   : > { %v1177_v59 = vpop.f32.mrf.mxu0  ;;  %v1193_v61 = vpop.f32.mrf.mxu1  ;;  %v1148_v1 = vadd.f32 %v1147_v62, %v1146_v54  ;;  %v1156_v2 = vrot.slane %v1155_v63, 2 }
 0x133   : > { %v1240_v57 = vpop.f32.mrf.mxu3  ;;  %2495 = vmatmul.msk.bf16.vlgmr.msrb.gmra.mxu2 %vm238_vm2, %v2494_v0 }
 0x134   : > { %v1149_v3 = vrot.slane %v1148_v1, 1  ;;  %v1157_v19 = vadd.f32 %v1156_v2, %v1155_v63 }
 0x136   : > { %v1150_v4 = vadd.f32 %v1149_v3, %v1148_v1  ;;  %v1158_v5 = vrot.slane %v1157_v19, 1  ;;  %v1221_v20 = vpop.f32.mrf.mxu2 }
 0x137   : > { %v1225_v21 = vadd.f32 %v1221_v20, %v1192_v6 }
 0x138   : > { %v1159_v17 = vadd.f32 %v1158_v5, %v1157_v19  ;;  %v1151_v18 = vadd.f32 %v1150_v4, %v3086_v12 }
 0x139   : > { %v1244_v23 = vadd.f32 %v1240_v57, %v1225_v21 }
 0x13a   : > { %v1259_v13 = vpop.f32.mrf.mxu0  ;;  %v1290_v8 = vpop.f32.mrf.mxu1  ;;  %v1160_v22 = vadd.f32 %v1159_v17, %v3092_v26 }
 0x13b   : > { %v1242_v14 = vpop.f32.mrf.mxu3  ;;  %v1263_v28 = vadd.f32 %v1259_v13, %v1244_v23 }
 0x13d   : > { %v1294_v16 = vadd.f32 %v1290_v8, %v1263_v28 }
 0x13e   : > { %v1223_v7 = vpop.f32.mrf.mxu2 }
 0x142   : > { %v1261_v25 = vpop.f32.mrf.mxu0  ;;  %v1292_v27 = vpop.f32.mrf.mxu1 }
 0x143   : > { %v1328_v24 = vpop.f32.mrf.mxu3 }
 0x146   : > { %v1309_v29 = vpop.f32.mrf.mxu2 }
 0x147   : > { %v1313_v30 = vadd.f32 %v1309_v29, %v1294_v16 }
 0x149   : > { %v1332_v33 = vadd.f32 %v1328_v24, %v1313_v30 }
 0x14a   : > { %v1359_v31 = vpop.f32.mrf.mxu0  ;;  %v1398_v32 = vpop.f32.mrf.mxu1 }
 0x14b   : > { %v1330_v58 = vpop.f32.mrf.mxu3  ;;  %v1363_v34 = vadd.f32 %v1359_v31, %v1332_v33 }
 0x14d   : > { %v1364_v35 = vpack.c.bf16 %v1363_v34, %v1363_v34  ;;  %v1367_v12 = vsel %vm474_vm4, %v1363_v34, 0.0  ;;  %v1375_v60 = vmul.f32 %v1363_v34, %v1363_v34 }
 0x14e   : > { %v1368_v26 = vrot.slane %v1367_v12, 4  ;;  %v1311_v9 = vpop.f32.mrf.mxu2 }
 0x14f   : > { %v1376_v15 = vsel %vm474_vm4, %v1375_v60, 0.0  ;;  %2401 = vst.msk [vmem:[%s2999_s10 + $0x10] sm:$0xf] %vm472_vm3, %v1364_v35 }
 0x150   : > { %v1369_v38 = vadd.f32 %v1368_v26, %v1367_v12  ;;  %v1377_v39 = vrot.slane %v1376_v15, 4 }
 0x152   : > { %v1361_v36 = vpop.f32.mrf.mxu0  ;;  %v1400_v37 = vpop.f32.mrf.mxu1  ;;  %v1370_v40 = vrot.slane %v1369_v38, 2  ;;  %v1378_v41 = vadd.f32 %v1377_v39, %v1376_v15 }
 0x153   : > { %v1444_v11 = vpop.f32.mrf.mxu3 }
 0x154   : > { %v1371_v42 = vadd.f32 %v1370_v40, %v1369_v38  ;;  %v1379_v43 = vrot.slane %v1378_v41, 2 }
 0x156   : > { %v1372_v44 = vrot.slane %v1371_v42, 1  ;;  %v1380_v45 = vadd.f32 %v1379_v43, %v1378_v41  ;;  %v1414_v46 = vpop.f32.mrf.mxu2 }
 0x157   : > { %v1415_v51 = vadd.f32 %v1414_v46, %v1398_v32 }
 0x158   : > { %v1373_v10 = vadd.f32 %v1372_v44, %v1371_v42  ;;  %v1381_v50 = vrot.slane %v1380_v45, 1 }
 0x159   : > { %v1448_v55 = vadd.f32 %v1444_v11, %v1415_v51 }
 0x15a   : > { %v1463_v48 = vpop.f32.mrf.mxu0  ;;  %v1482_v49 = vpop.f32.mrf.mxu1  ;;  %v1374_v52 = vadd.f32 %v1373_v10, %v1151_v18  ;;  %v1382_v53 = vadd.f32 %v1381_v50, %v1380_v45 }
 0x15b   : > { %v1446_v47 = vpop.f32.mrf.mxu3  ;;  %v1467_v62 = vadd.f32 %v1463_v48, %v1448_v55 }
 0x15c   : > { %v1383_v54 = vadd.f32 %v1382_v53, %v1160_v22 }
 0x15d   : > { %v1486_v63 = vadd.f32 %v1482_v49, %v1467_v62 }
 0x15e   : > { %v1416_v56 = vpop.f32.mrf.mxu2 }
 0x162   : > { %v1465_v59 = vpop.f32.mrf.mxu0  ;;  %v1484_v61 = vpop.f32.mrf.mxu1 }
 0x163   : > { %v1532_v57 = vpop.f32.mrf.mxu3 }
 0x166   : > { %v1513_v0 = vpop.f32.mrf.mxu2 }
 0x167   : > { %v1517_v2 = vadd.f32 %v1513_v0, %v1486_v63 }
 0x169   : > { %v1536_v4 = vadd.f32 %v1532_v57, %v1517_v2 }
 0x16a   : > { %v1551_v3 = vpop.f32.mrf.mxu0  ;;  %v1582_v19 = vpop.f32.mrf.mxu1 }
 0x16b   : > { %v1534_v1 = vpop.f32.mrf.mxu3  ;;  %v1555_v5 = vadd.f32 %v1551_v3, %v1536_v4 }
 0x16d   : > { %v1586_v20 = vadd.f32 %v1582_v19, %v1555_v5 }
 0x16e   : > { %v1515_v14 = vpop.f32.mrf.mxu2 }
 0x16f   : > { %v1587_v13 = vpack.c.bf16 %v1586_v20, %v1586_v20  ;;  %v1590_v8 = vsel %vm474_vm4, %v1586_v20, 0.0  ;;  %v1598_v17 = vmul.f32 %v1586_v20, %v1586_v20 }
 0x170   : > { %v1591_v22 = vrot.slane %v1590_v8, 4 }
 0x171   : > { %v1599_v23 = vsel %vm474_vm4, %v1598_v17, 0.0  ;;  %2435 = vst.msk [vmem:[%s2999_s10 + $0x14] sm:$0xf] %vm472_vm3, %v1587_v13 }
 0x172   : > { %v1553_v18 = vpop.f32.mrf.mxu0  ;;  %v1584_v21 = vpop.f32.mrf.mxu1  ;;  %v1592_v7 = vadd.f32 %v1591_v22, %v1590_v8  ;;  %v1600_v24 = vrot.slane %v1599_v23, 4 }
 0x173   : > { %v1637_v6 = vpop.f32.mrf.mxu3 }
 0x174   : > { %v1593_v25 = vrot.slane %v1592_v7, 2  ;;  %v1601_v27 = vadd.f32 %v1600_v24, %v1599_v23 }
 0x176   : > { %v1594_v28 = vadd.f32 %v1593_v25, %v1592_v7  ;;  %v1602_v16 = vrot.slane %v1601_v27, 2  ;;  %v1621_v29 = vpop.f32.mrf.mxu2 }
 0x177   : > { %v1638_v15 = vadd.f32 %v1637_v6, %v1621_v29 }
 0x178   : > { %v1595_v32 = vrot.slane %v1594_v28, 1  ;;  %v1603_v33 = vadd.f32 %v1602_v16, %v1601_v27 }
 0x17a   : > { %v1667_v30 = vpop.f32.mrf.mxu0  ;;  %v1686_v31 = vpop.f32.mrf.mxu1  ;;  %v1596_v34 = vadd.f32 %v1595_v32, %v1594_v28  ;;  %v1604_v35 = vrot.slane %v1603_v33, 1 }
 0x17b   : > { %v1639_v58 = vpop.f32.mrf.mxu3  ;;  %v1671_v38 = vadd.f32 %v1667_v30, %v1638_v15 }
 0x17c   : > { %v1605_v12 = vadd.f32 %v1604_v35, %v1603_v33  ;;  %v3122_v60 = vadd.f32 %v1596_v34, %v1374_v52 }
 0x17d   : > { %v1690_v41 = vadd.f32 %v1686_v31, %v1671_v38 }
 0x17e   : > { %v3124_v26 = vadd.f32 %v1605_v12, %v1383_v54  ;;  %v1623_v9 = vpop.f32.mrf.mxu2 }
 0x182   : > { %v1669_v36 = vpop.f32.mrf.mxu0  ;;  %v1688_v37 = vpop.f32.mrf.mxu1 }
 0x183   : > { %v1736_v11 = vpop.f32.mrf.mxu3 }
 0x186   : > { %v1705_v39 = vpop.f32.mrf.mxu2 }
 0x187   : > { %v1709_v44 = vadd.f32 %v1705_v39, %v1690_v41 }
 0x189   : > { %v1740_v45 = vadd.f32 %v1736_v11, %v1709_v44 }
 0x18a   : > { %v1755_v42 = vpop.f32.mrf.mxu0  ;;  %v1774_v43 = vpop.f32.mrf.mxu1 }
 0x18b   : > { %v1738_v40 = vpop.f32.mrf.mxu3  ;;  %v1759_v10 = vadd.f32 %v1755_v42, %v1740_v45 }
 0x18d   : > { %v1778_v50 = vadd.f32 %v1774_v43, %v1759_v10 }
 0x18e   : > { %v1707_v46 = vpop.f32.mrf.mxu2 }
 0x192   : > { %v1757_v48 = vpop.f32.mrf.mxu0  ;;  %v1776_v49 = vpop.f32.mrf.mxu1 }
 0x193   : > { %v1844_v47 = vpop.f32.mrf.mxu3 }
 0x196   : > { %v1805_v51 = vpop.f32.mrf.mxu2 }
 0x197   : > { %v1809_v53 = vadd.f32 %v1805_v51, %v1778_v50 }
 0x199   : > { %v1810_v56 = vpack.c.bf16 %v1809_v53, %v1809_v53  ;;  %v1821_v4 = vmul.f32 %v1809_v53, %v1809_v53  ;;  %v1813_v20 = vsel %vm474_vm4, %v1809_v53, 0.0 }
 0x19a   : > { %v1860_v54 = vpop.f32.mrf.mxu0  ;;  %v1890_v55 = vpop.f32.mrf.mxu1  ;;  %v1814_v13 = vrot.slane %v1813_v20, 4 }
 0x19b   : > { %v1846_v52 = vpop.f32.mrf.mxu3  ;;  %2469 = vst.msk [vmem:[%s2999_s10 + $0x18] sm:$0xf] %vm472_vm3, %v1810_v56  ;;  %v1861_v63 = vadd.f32 %v1860_v54, %v1844_v47  ;;  %v1822_v14 = vsel %vm474_vm4, %v1821_v4, 0.0 }
 0x19c   : > { %v1823_v22 = vrot.slane %v1822_v14, 4  ;;  %v1815_v7 = vadd.f32 %v1814_v13, %v1813_v20 }
 0x19d   : > { %v1894_v2 = vadd.f32 %v1890_v55, %v1861_v63 }
 0x19e   : > { %v1807_v57 = vpop.f32.mrf.mxu2  ;;  %v1824_v24 = vadd.f32 %v1823_v22, %v1822_v14  ;;  %v1816_v27 = vrot.slane %v1815_v7, 2 }
 0x1a0   : > { %v1825_v58 = vrot.slane %v1824_v24, 2  ;;  %v1817_v31 = vadd.f32 %v1816_v27, %v1815_v7 }
 0x1a2   : > { %v1862_v61 = vpop.f32.mrf.mxu0  ;;  %v1892_v62 = vpop.f32.mrf.mxu1  ;;  %v1826_v35 = vadd.f32 %v1825_v58, %v1824_v24  ;;  %v1818_v11 = vrot.slane %v1817_v31, 1 }
 0x1a3   : > { %v1928_v59 = vpop.f32.mrf.mxu3 }
 0x1a6   : > { %v1909_v0 = vpop.f32.mrf.mxu2 }
 0x1a7   : > { %v1913_v5 = vadd.f32 %v1909_v0, %v1894_v2 }
 0x1a9   : > { %v1932_v6 = vadd.f32 %v1928_v59, %v1913_v5 }
 0x1aa   : > { %v1959_v3 = vpop.f32.mrf.mxu0  ;;  %v1978_v19 = vpop.f32.mrf.mxu1 }
 0x1ab   : > { %v1930_v1 = vpop.f32.mrf.mxu3  ;;  %v1963_v23 = vadd.f32 %v1959_v3, %v1932_v6 }
 0x1ad   : > { %v1982_v25 = vadd.f32 %v1978_v19, %v1963_v23 }
 0x1ae   : > { %v1911_v8 = vpop.f32.mrf.mxu2 }
 0x1b2   : > { %v1961_v18 = vpop.f32.mrf.mxu0  ;;  %v1980_v21 = vpop.f32.mrf.mxu1 }
 0x1b3   : > { %v2028_v17 = vpop.f32.mrf.mxu3 }
 0x1b6   : > { %v1997_v28 = vpop.f32.mrf.mxu2 }
 0x1b7   : > { %v2001_v29 = vadd.f32 %v1997_v28, %v1982_v25 }
 0x1b9   : > { %v2032_v30 = vadd.f32 %v2028_v17, %v2001_v29 }
 0x1bb   : > { %v2030_v16 = vpop.f32.mrf.mxu3  ;;  %v2033_v32 = vpack.c.bf16 %v2032_v30, %v2032_v30  ;;  %v2036_v33 = vsel %vm474_vm4, %v2032_v30, 0.0  ;;  %v2044_v34 = vmul.f32 %v2032_v30, %v2032_v30 }
 0x1bc   : > { %v2037_v12 = vrot.slane %v2036_v33, 4 }
 0x1bd   : > { %v2045_v9 = vsel %vm474_vm4, %v2044_v34, 0.0  ;;  %2503 = vst.msk [vmem:[%s2999_s10 + $0x1c] sm:$0xf] %vm472_vm3, %v2033_v32 }
 0x1be   : > { %v2038_v15 = vadd.f32 %v2037_v12, %v2036_v33  ;;  %v2046_v36 = vrot.slane %v2045_v9, 4  ;;  %v1999_v37 = vpop.f32.mrf.mxu2 }
 0x1bf   : > { %2614 = shalt.err (!%p2611_p3)
}
 0x1c0   : > { %s2712_s10 = smov 64   ;;  %s2713_s11 = smov 4   ;;  %v1827_v38 = vrot.slane %v1826_v35, 1  ;;  %v2039_v39 = vrot.slane %v2038_v15, 2  ;;  %v2047_v40 = vadd.f32 %v2046_v36, %v2045_v9  ;;  %v1819_v41 = vadd.f32 %v1818_v11, %v1817_v31 }
 0x1c1   : > { %2535 = dma.vmem_to_hbm [thread:$0]  (%p2779_p5), %s3135_s22, 512, %s2080_s23, %s2057_s27, %s2712_s10, %s2712_s10, %s2713_s11   ;;  %vm2053_vm5 = vcmask 57344  }
 0x1c2   : > { %v2040_v42 = vadd.f32 %v2039_v39, %v2038_v15  ;;  %v2048_v43 = vrot.slane %v2047_v40, 2  ;;  %s2091_s14 = scalar_lea.hbm %s3228_s3, %s2760_s19  ;;  %s2061_s28 = sand.u32 1, %s2760_s19   ;;  %v1828_v44 = vadd.f32 %v1827_v38, %v1826_v35  ;;  %v1820_v48 = vadd.f32 %v1819_v41, %v3122_v60 }
 0x1c3   : > { %s2104_s6 = scalar_lea.hbm %s3229_s4, %s2760_s19  ;;  %s203_s22 = scalar_lea.vmem [#allocation4], %s2984_s29 }
 0x1c4   : > { %v2049_v45 = vadd.f32 %v2048_v43, %v2047_v40  ;;  %v2041_v46 = vrot.slane %v2040_v42, 1  ;;  %s3163_s23 = sshll.u32 %s203_s22, 4  ;;  %s3165_s27 = sshll.u32 %s2091_s14, 4  ;;  %v1829_v50 = vadd.f32 %v1828_v44, %v3124_v26  ;;  %s2094_s23 = int_to_ptr.vmem [resolvable:$true] %s3163_s23  ;;  %s2096_s27 = int_to_ptr.hbm [resolvable:$true] %s3165_s27 }
 0x1c5   : > { %s209_s7 = scalar_lea.vmem [#allocation6], %s2984_s29  ;;  %s3171_s9 = sshll.u32 %s2104_s6, 4  ;;  %s2109_s9 = int_to_ptr.hbm [resolvable:$true] %s3171_s9 }
 0x1c6   : > { %v2050_v47 = vrot.slane %v2049_v45, 1  ;;  %v2042_v49 = vadd.f32 %v2041_v46, %v2040_v42  ;;  %s3169_s8 = sshll.u32 %s209_s7, 4  ;;  %s2062_s19 = scalar_lea.sflag [#allocation5], %s2061_s28  ;;  %s2107_s8 = int_to_ptr.vmem [resolvable:$true] %s3169_s8 }
 0x1c7   : > { %s2629_s29 = sshra.s32 %s2096_s27, 4  ;;  %s2635_s13 = scalar_lea.hbm %s3228_s3, 2  ;;  %s2630_s29 = int_to_ptr.hbm [resolvable:$true] %s2629_s29 }
 0x1c8   : > { %v2043_v10 = vadd.f32 %v2042_v49, %v1820_v48  ;;  %v2051_v51 = vadd.f32 %v2050_v47, %v2049_v45  ;;  %s2631_s10 = scalar_lea.hbm %s2630_s29, 1  ;;  %p2636_p9 = scmp.lt.s32.totalorder %s2630_s29, %s3228_s3 }
 0x1c9   : > { %p2632_p4 = scmp.ne.s32.totalorder %s2630_s29, %s2631_s10  ;;  %p2637_p10 = scmp.lt.s32.totalorder %s2635_s13, %s2631_s10 }
 0x1ca   : > { %2054 = vst.msk [vmem:[%s203_s22] sm:$0x1] %vm2053_vm5, %v2043_v10  ;;  %v2052_v52 = vadd.f32 %v2051_v51, %v1829_v50 }
 0x1cb   : > { %p2633_p7 = pnand %p2632_p4, %p2779_p5  ;;  %p2638_p11 = por %p2637_p10, %p2636_p9 }
 0x1cd   : > { %p2634_p8 = pneg %p2633_p7 }
 0x1cf   : > { %p2639_p12 = pnand %p2638_p11, %p2634_p8 }
 0x1d1   : > { %2642 = shalt.err (!%p2639_p12)
}
 0x1d2   : > { %2536 = dma.vmem_to_hbm [thread:$0]  (%p2779_p5), %s2094_s23, 16, %s2096_s27, %s2062_s19   ;;  %2055 = vst.msk [vmem:[%s209_s7] sm:$0x1] %vm2053_vm5, %v2052_v52 }
 0x1d3   : > { %s2657_s28 = sshra.s32 %s2109_s9, 4  ;;  %s2663_s29 = scalar_lea.hbm %s3229_s4, 2  ;;  %s2658_s28 = int_to_ptr.hbm [resolvable:$true] %s2657_s28 }
 0x1d4   : > { %s2659_s5 = scalar_lea.hbm %s2658_s28, 1  ;;  %p2664_p2 = scmp.lt.s32.totalorder %s2658_s28, %s3229_s4 }
 0x1d5   : > { %p2660_p13 = scmp.ne.s32.totalorder %s2658_s28, %s2659_s5  ;;  %p2665_p3 = scmp.lt.s32.totalorder %s2663_s29, %s2659_s5 }
 0x1d7   : > { %p2661_p0 = pnand %p2660_p13, %p2779_p5  ;;  %p2666_p4 = por %p2665_p3, %p2664_p2 }
 0x1d9   : > { %p2662_p1 = pneg %p2661_p0 }
 0x1db   : > { %p2667_p7 = pnand %p2666_p4, %p2662_p1 }
 0x1dd   : > { %2670 = shalt.err (!%p2667_p7)
}
 0x1de   : > { %2537 = dma.vmem_to_hbm [thread:$0]  (%p2779_p5), %s2107_s8, 16, %s2109_s9, %s2062_s19  }
 0x1df PF: > { %p2551_p8 = scmp.ge.s32.totalorder %s2709_s18, 2  ;;  %s2120_s23 = sand.u32 1, %s2697_s15  }
 0x1e0   : > { %s2121_s27 = scalar_lea.sflag [#allocation3], %s2120_s23 }
 0x1e1   : > { %p2542_p9 = pnand %p2551_p8, %p2783_p6 }
 0x1e3   : > { %p2543_p10 = pneg %p2542_p9 }
 0x1e5   : > { %2688 = dma.done.wait (%p2543_p10), %s2121_s27, 512  }
 0x1e6   : > { %2690 = vsyncadd (%p2543_p10), %s2121_s27, 4294966784  ;;  %s2130_s25 = sand.u32 1, %s2221_s20  }
 0x1e7   : > { %s2131_s7 = scalar_lea.sflag [#allocation5], %s2130_s25 }
 0x1e8   : > { %2692 = dma.done.wait (%p2543_p10), %s2131_s7, 32  }
 0x1e9   : > { %2694 = vsyncadd (%p2543_p10), %s2131_s7, 4294967264  ;;  %p18_p5 = scmp.ge.s32.totalorder %s2764_s21, 4   ;;  %s3232_s15 = smov %s2701_s16 }
 0x1ea   : > { %s3233_s16 = smov %s2705_s17  ;;  %s3234_s17 = smov %s2777_s24 }
 0x1eb   : > { %s3235_s18 = smov %s2764_s21  ;;  %20 = sbr.rel (!%p18_p5) target bundleno = 5 (0x5), region = 143 }
 0x1f0   :  { %2145 = vsyncpa [#allocation3], 1 }
 0x1f1   :  { %2147 = vsyncpa [#allocation3 + $0x1], 1 }
 0x1f2   :  { %2148 = vsyncpa [#allocation5], 1 }
 0x1f3   :  { %2150 = vsyncpa [#allocation5 + $0x1], 1 }

</bundles_post_ra>
